<compile_context>
chip_gen: v6e
topology: v6e:2x2x1
jax: 0.10.0
libtpu: 0.0.40
codegen_flags: <defaults>
</compile_context>

<pallas_src>
import jax
import jax.numpy as jnp
from jax.experimental import pallas as pl
from jax.experimental.pallas import tpu as pltpu


def _round_up(x, m):
    return ((x + m - 1) // m) * m


def phys_encoder_kernel(
    x_ref,            # (TB, D_pad)       bf16
    w1_ref, b1_ref,   # (D_pad, H)  bf16, (1, H)  f32
    w2_ref, b2_ref,   # (H, H2)     bf16, (1, H2) f32
    wl_ref, bl_ref,   # (H2, L)     bf16, (1, L)  f32
    ws_ref, bs_ref,   # (1, L)      f32,  (1, 1)  f32   (stress head as a row)
    out_ref,          # (TB, OUT_L) f32 : lanes [0,L) = latent, lanes [L,..) = stress
):
    x = x_ref[...]                                           # bf16

    # feature_extractor (Dropout = identity at inference)
    h1 = jnp.dot(x, w1_ref[...], preferred_element_type=jnp.float32) + b1_ref[...]
    h1 = jnp.maximum(h1, 0.0)

    h2 = jnp.dot(h1.astype(jnp.bfloat16), w2_ref[...],
                 preferred_element_type=jnp.float32) + b2_ref[...]
    h2 = jnp.maximum(h2, 0.0)

    # latent_layer
    latent = jnp.dot(h2.astype(jnp.bfloat16), wl_ref[...],
                     preferred_element_type=jnp.float32) + bl_ref[...]

    # stress_predictor + sigmoid: N=1 MXU pass replaced by VPU mul + lane reduce
    logit = jnp.sum(latent * ws_ref[...], axis=-1, keepdims=True) + bs_ref[...]
    stress = jax.nn.sigmoid(logit)

    # pack a lane-dense output slab: [latent | broadcast(stress)] -> one full store
    tb, latent_dim = latent.shape
    extra = out_ref.shape[-1] - latent_dim
    packed = jnp.concatenate(
        [latent, jnp.broadcast_to(stress, (tb, extra))], axis=-1)
    out_ref[...] = packed.astype(out_ref.dtype)


def phys_encoder_forward(x, params, *, tile_b=256):
    """x: [B, input_dim] float32.  Returns (latent [B, L], stress [B, 1]) f32."""
    B, D_in = x.shape
    w1, b1, w2, b2, wl, bl, ws, bs = params
    H = w1.shape[1]
    H2 = w2.shape[1]
    L = wl.shape[1]

    # Batch tile: >= 8 sublanes; default 256 to fill the MXU M dimension.
    tile_b = min(tile_b, _round_up(B, 8))
    B_pad = _round_up(B, tile_b)
    D_pad = _round_up(max(D_in, 128), 128)           # lane-align the input
    OUT_L = _round_up(L + 1, 128)                    # lane-dense packed output

    # bf16 matmul operands (f32 accumulation in-kernel); biases stay f32.
    xp = jnp.zeros((B_pad, D_pad), jnp.bfloat16)
    xp = xp.at[:B, :D_in].set(x.astype(jnp.bfloat16))
    w1p = jnp.zeros((D_pad, H), jnp.bfloat16)
    w1p = w1p.at[:D_in, :].set(w1.astype(jnp.bfloat16))
    w2b = w2.astype(jnp.bfloat16)
    wlb = wl.astype(jnp.bfloat16)
    ws_row = ws.reshape(1, L).astype(jnp.float32)    # stress head as an f32 row
    bsb = bs.reshape(1, 1).astype(jnp.float32)

    grid = (B_pad // tile_b,)

    def full_spec(shape):
        return pl.BlockSpec(shape, lambda i: (0, 0))

    in_specs = [
        pl.BlockSpec((tile_b, D_pad), lambda i: (i, 0)),
        full_spec(w1p.shape), full_spec(b1.shape),
        full_spec(w2b.shape), full_spec(b2.shape),
        full_spec(wlb.shape), full_spec(bl.shape),
        full_spec(ws_row.shape), full_spec(bsb.shape),
    ]
    out_specs = pl.BlockSpec((tile_b, OUT_L), lambda i: (i, 0))
    out_shape = jax.ShapeDtypeStruct((B_pad, OUT_L), jnp.float32)

    # Only very large batch tiles need extra scoped-VMEM headroom (v5e default
    # scoped limit is 16 MiB); at tile_b=256 the working set is < 1 MiB.
    vmem_limit = 48 * 1024 * 1024 if tile_b >= 4096 else None
    compiler_params = pltpu.CompilerParams(
        dimension_semantics=("parallel",),
        vmem_limit_bytes=vmem_limit,
    )

    packed = pl.pallas_call(
        phys_encoder_kernel,
        out_shape=out_shape,
        grid_spec=pltpu.PrefetchScalarGridSpec(
            num_scalar_prefetch=0,
            grid=grid,
            in_specs=in_specs,
            out_specs=out_specs,
        ),
        compiler_params=compiler_params,
    )(xp, w1p, b1, w2b, b2, wlb, bl, ws_row, bsb)

    latent = packed[:B, :L]
    stress = packed[:B, L:L + 1]
    return latent, stress


def init_params(key, input_dim=25, hidden_dim=128, latent_dim=64):
    """PyTorch-default (uniform +-1/sqrt(fan_in)) init.

    Weights are pre-transposed to [in, out], biases are [1, out], all f32.
    """
    dims = [
        (input_dim, hidden_dim),
        (hidden_dim, hidden_dim // 2),
        (hidden_dim // 2, latent_dim),
        (latent_dim, 1),
    ]
    params = []
    for fan_in, fan_out in dims:
        key, kw, kb = jax.random.split(key, 3)
        bound = 1.0 / jnp.sqrt(fan_in)
        w = jax.random.uniform(kw, (fan_in, fan_out), jnp.float32, -bound, bound)
        b = jax.random.uniform(kb, (1, fan_out), jnp.float32, -bound, bound)
        params.extend([w, b])
    return tuple(params)


def reference_forward(x, params):
    """Plain-JAX f32 reference of the same forward pass."""
    w1, b1, w2, b2, wl, bl, ws, bs = params
    h = jnp.maximum(x @ w1 + b1, 0.0)
    h = jnp.maximum(h @ w2 + b2, 0.0)
    latent = h @ wl + bl
    stress = jax.nn.sigmoid(latent @ ws + bs)
    return latent, stress


if __name__ == "__main__":
    key = jax.random.PRNGKey(0)
    k_x, k_p = jax.random.split(key)

    input_dim, hidden_dim, latent_dim = 25, 128, 64
    batch = 500    # not a multiple of tile_b -> exercises the batch-padding path
    tile_b = 256   # 256-multiple fills the MXU; B_pad=512 -> 2 parallel grid steps

    x = jax.random.normal(k_x, (batch, input_dim), jnp.float32)
    params = init_params(k_p, input_dim, hidden_dim, latent_dim)

    latent, stress = phys_encoder_forward(x, params, tile_b=tile_b)
    latent = jax.block_until_ready(latent)
    stress = jax.block_until_ready(stress)

    # sanity-check against pure-JAX f32 reference (bf16 matmul operands ->
    # loosened tolerances vs the all-f32 path)
    lat_ref, str_ref = reference_forward(x, params)
    assert latent.shape == (batch, latent_dim)
    assert stress.shape == (batch, 1)
    assert jnp.allclose(latent, lat_ref, atol=5e-2, rtol=5e-2)
    assert jnp.allclose(stress, str_ref, atol=2e-2, rtol=2e-2)
    assert bool(jnp.all(jnp.isfinite(latent)))
    assert bool(jnp.all((stress >= 0.0) & (stress <= 1.0)))

    print("KERNEL_OK")
</pallas_src>

<mosaic_0001>
module attributes {stable_mosaic.version = 11 : i64} {
  func.func @phys_encoder_kernel(%arg0: i32, %arg1: memref<256x128xbf16, #tpu.memory_space<vmem>>, %arg2: memref<128x128xbf16, #tpu.memory_space<vmem>>, %arg3: memref<1x128xf32, #tpu.memory_space<vmem>>, %arg4: memref<128x64xbf16, #tpu.memory_space<vmem>>, %arg5: memref<1x64xf32, #tpu.memory_space<vmem>>, %arg6: memref<64x64xbf16, #tpu.memory_space<vmem>>, %arg7: memref<1x64xf32, #tpu.memory_space<vmem>>, %arg8: memref<1x64xf32, #tpu.memory_space<vmem>>, %arg9: memref<1x1xf32, #tpu.memory_space<vmem>>, %arg10: memref<256x128xf32, #tpu.memory_space<vmem>>) attributes {dimension_semantics = [#tpu.dimension_semantics<parallel>], iteration_bounds = array<i64: 2>, scalar_prefetch = 0 : i64, scratch_operands = 0 : i64, tpu.core_type = #tpu.core_type<tc>, window_params = [{transform_indices = @transform_0, window_bounds = array<i64: 256, 128>}, {pipeline_mode = #tpu.pipeline_mode<synchronous>, transform_indices = @transform_1, window_bounds = array<i64: 128, 128>}, {pipeline_mode = #tpu.pipeline_mode<synchronous>, transform_indices = @transform_2, window_bounds = array<i64: 1, 128>}, {pipeline_mode = #tpu.pipeline_mode<synchronous>, transform_indices = @transform_3, window_bounds = array<i64: 128, 64>}, {pipeline_mode = #tpu.pipeline_mode<synchronous>, transform_indices = @transform_4, window_bounds = array<i64: 1, 64>}, {pipeline_mode = #tpu.pipeline_mode<synchronous>, transform_indices = @transform_5, window_bounds = array<i64: 64, 64>}, {pipeline_mode = #tpu.pipeline_mode<synchronous>, transform_indices = @transform_6, window_bounds = array<i64: 1, 64>}, {pipeline_mode = #tpu.pipeline_mode<synchronous>, transform_indices = @transform_7, window_bounds = array<i64: 1, 64>}, {pipeline_mode = #tpu.pipeline_mode<synchronous>, transform_indices = @transform_8, window_bounds = array<i64: 1, 1>}, {transform_indices = @transform_9, window_bounds = array<i64: 256, 128>}]} {
    %c0 = arith.constant 0 : index
    %c0_0 = arith.constant 0 : index
    %0 = vector.load %arg1[%c0, %c0_0] : memref<256x128xbf16, #tpu.memory_space<vmem>>, vector<256x128xbf16>
    %c0_1 = arith.constant 0 : index
    %c0_2 = arith.constant 0 : index
    %1 = vector.load %arg2[%c0_1, %c0_2] : memref<128x128xbf16, #tpu.memory_space<vmem>>, vector<128x128xbf16>
    %cst = arith.constant dense<0.000000e+00> : vector<256x128xf32>
    %2 = tpu.matmul %0, %1, %cst {dimension_numbers = #tpu.dot_dimension_numbers<[1], [0], [0], [1], [0, 0, 1, 1], [], []>} : vector<256x128xbf16>, vector<128x128xbf16>, vector<256x128xf32> -> vector<256x128xf32>
    %c0_3 = arith.constant 0 : index
    %c0_4 = arith.constant 0 : index
    %3 = vector.load %arg3[%c0_3, %c0_4] : memref<1x128xf32, #tpu.memory_space<vmem>>, vector<1x128xf32>
    %4 = vector.broadcast %3 : vector<1x128xf32> to vector<256x128xf32>
    %5 = arith.addf %2, %4 : vector<256x128xf32>
    %cst_5 = arith.constant 0.000000e+00 : f32
    %6 = vector.broadcast %cst_5 : f32 to vector<256x128xf32>
    %7 = arith.maximumf %5, %6 : vector<256x128xf32>
    %8 = arith.truncf %7 : vector<256x128xf32> to vector<256x128xbf16>
    %c0_6 = arith.constant 0 : index
    %c0_7 = arith.constant 0 : index
    %9 = vector.load %arg4[%c0_6, %c0_7] : memref<128x64xbf16, #tpu.memory_space<vmem>>, vector<128x64xbf16>
    %cst_8 = arith.constant dense<0.000000e+00> : vector<256x64xf32>
    %10 = tpu.matmul %8, %9, %cst_8 {dimension_numbers = #tpu.dot_dimension_numbers<[1], [0], [0], [1], [0, 0, 1, 1], [], []>} : vector<256x128xbf16>, vector<128x64xbf16>, vector<256x64xf32> -> vector<256x64xf32>
    %c0_9 = arith.constant 0 : index
    %c0_10 = arith.constant 0 : index
    %11 = vector.load %arg5[%c0_9, %c0_10] : memref<1x64xf32, #tpu.memory_space<vmem>>, vector<1x64xf32>
    %12 = vector.broadcast %11 : vector<1x64xf32> to vector<256x64xf32>
    %13 = arith.addf %10, %12 : vector<256x64xf32>
    %cst_11 = arith.constant 0.000000e+00 : f32
    %14 = vector.broadcast %cst_11 : f32 to vector<256x64xf32>
    %15 = arith.maximumf %13, %14 : vector<256x64xf32>
    %16 = arith.truncf %15 : vector<256x64xf32> to vector<256x64xbf16>
    %c0_12 = arith.constant 0 : index
    %c0_13 = arith.constant 0 : index
    %17 = vector.load %arg6[%c0_12, %c0_13] : memref<64x64xbf16, #tpu.memory_space<vmem>>, vector<64x64xbf16>
    %cst_14 = arith.constant dense<0.000000e+00> : vector<256x64xf32>
    %18 = tpu.matmul %16, %17, %cst_14 {dimension_numbers = #tpu.dot_dimension_numbers<[1], [0], [0], [1], [0, 0, 1, 1], [], []>} : vector<256x64xbf16>, vector<64x64xbf16>, vector<256x64xf32> -> vector<256x64xf32>
    %c0_15 = arith.constant 0 : index
    %c0_16 = arith.constant 0 : index
    %19 = vector.load %arg7[%c0_15, %c0_16] : memref<1x64xf32, #tpu.memory_space<vmem>>, vector<1x64xf32>
    %20 = vector.broadcast %19 : vector<1x64xf32> to vector<256x64xf32>
    %21 = arith.addf %18, %20 : vector<256x64xf32>
    %c0_17 = arith.constant 0 : index
    %c0_18 = arith.constant 0 : index
    %22 = vector.load %arg8[%c0_17, %c0_18] : memref<1x64xf32, #tpu.memory_space<vmem>>, vector<1x64xf32>
    %23 = vector.broadcast %22 : vector<1x64xf32> to vector<256x64xf32>
    %24 = arith.mulf %21, %23 : vector<256x64xf32>
    %cst_19 = arith.constant dense<0.000000e+00> : vector<256xf32>
    %25 = vector.multi_reduction <add>, %24, %cst_19 [1] : vector<256x64xf32> to vector<256xf32>
    %26 = vector.shape_cast %25 : vector<256xf32> to vector<256x1xf32>
    %c0_20 = arith.constant 0 : index
    %c0_21 = arith.constant 0 : index
    %27 = vector.load %arg9[%c0_20, %c0_21] : memref<1x1xf32, #tpu.memory_space<vmem>>, vector<1x1xf32>
    %28 = vector.broadcast %27 : vector<1x1xf32> to vector<256x1xf32>
    %29 = arith.addf %26, %28 : vector<256x1xf32>
    %30 = arith.negf %29 : vector<256x1xf32>
    %31 = math.exp %30 : vector<256x1xf32>
    %cst_22 = arith.constant 1.000000e+00 : f32
    %32 = vector.broadcast %cst_22 : f32 to vector<256x1xf32>
    %33 = arith.addf %32, %31 : vector<256x1xf32>
    %34 = arith.divf %32, %33 : vector<256x1xf32>
    %35 = vector.shape_cast %34 : vector<256x1xf32> to vector<256x1xf32>
    %36 = vector.broadcast %35 : vector<256x1xf32> to vector<256x64xf32>
    %37 = tpu.concatenate %21, %36 in 1 : vector<256x64xf32>, vector<256x64xf32> -> vector<256x128xf32>
    %c0_23 = arith.constant 0 : index
    %c0_24 = arith.constant 0 : index
    %38 = vector.load %arg10[%c0_23, %c0_24] : memref<256x128xf32, #tpu.memory_space<vmem>>, vector<256x128xf32>
    tpu.vector_store %arg10[%c0_23, %c0_24], %37 {strides = array<i32>} : memref<256x128xf32, #tpu.memory_space<vmem>>, vector<256x128xf32>,
    return
  }
  func.func @transform_0(%arg0: i32) -> (i32, i32) {
    %c0_i32 = arith.constant 0 : i32
    %c0_i32_0 = arith.constant 0 : i32
    return %arg0, %c0_i32 : i32, i32
  }
  func.func @transform_1(%arg0: i32) -> (i32, i32) {
    %c0_i32 = arith.constant 0 : i32
    %c0_i32_0 = arith.constant 0 : i32
    %c0_i32_1 = arith.constant 0 : i32
    return %c0_i32, %c0_i32_0 : i32, i32
  }
  func.func @transform_2(%arg0: i32) -> (i32, i32) {
    %c0_i32 = arith.constant 0 : i32
    %c0_i32_0 = arith.constant 0 : i32
    %c0_i32_1 = arith.constant 0 : i32
    return %c0_i32, %c0_i32_0 : i32, i32
  }
  func.func @transform_3(%arg0: i32) -> (i32, i32) {
    %c0_i32 = arith.constant 0 : i32
    %c0_i32_0 = arith.constant 0 : i32
    %c0_i32_1 = arith.constant 0 : i32
    return %c0_i32, %c0_i32_0 : i32, i32
  }
  func.func @transform_4(%arg0: i32) -> (i32, i32) {
    %c0_i32 = arith.constant 0 : i32
    %c0_i32_0 = arith.constant 0 : i32
    %c0_i32_1 = arith.constant 0 : i32
    return %c0_i32, %c0_i32_0 : i32, i32
  }
  func.func @transform_5(%arg0: i32) -> (i32, i32) {
    %c0_i32 = arith.constant 0 : i32
    %c0_i32_0 = arith.constant 0 : i32
    %c0_i32_1 = arith.constant 0 : i32
    return %c0_i32, %c0_i32_0 : i32, i32
  }
  func.func @transform_6(%arg0: i32) -> (i32, i32) {
    %c0_i32 = arith.constant 0 : i32
    %c0_i32_0 = arith.constant 0 : i32
    %c0_i32_1 = arith.constant 0 : i32
    return %c0_i32, %c0_i32_0 : i32, i32
  }
  func.func @transform_7(%arg0: i32) -> (i32, i32) {
    %c0_i32 = arith.constant 0 : i32
    %c0_i32_0 = arith.constant 0 : i32
    %c0_i32_1 = arith.constant 0 : i32
    return %c0_i32, %c0_i32_0 : i32, i32
  }
  func.func @transform_8(%arg0: i32) -> (i32, i32) {
    %c0_i32 = arith.constant 0 : i32
    %c0_i32_0 = arith.constant 0 : i32
    %c0_i32_1 = arith.constant 0 : i32
    return %c0_i32, %c0_i32_0 : i32, i32
  }
  func.func @transform_9(%arg0: i32) -> (i32, i32) {
    %c0_i32 = arith.constant 0 : i32
    %c0_i32_0 = arith.constant 0 : i32
    return %arg0, %c0_i32 : i32, i32
  }
}

</mosaic_0001>

<bundles_post_ra>
// kernel: tpu_custom_call.1
= control target key start
LH: loop header
LB: loop body
LE: loop exit
PB: predicated region body
PF: predicated region fallthrough
CT: control target
= control target key end

     0   :  { %s3339_s0 = inlined_call_operand.hbm [shape: bf16[512,128], index: 0, kind: input, shape index: {}]   ;;  %s3340_s1 = inlined_call_operand.vmem [shape: bf16[128,128], index: 1, kind: input, shape index: {}]   ;;  %s3341_s2 = inlined_call_operand.vmem [shape: f32[1,128], index: 2, kind: input, shape index: {}]   ;;  %s3342_s3 = inlined_call_operand.vmem [shape: bf16[128,64], index: 3, kind: input, shape index: {}]   ;;  %s3343_s4 = inlined_call_operand.vmem [shape: f32[1,64], index: 4, kind: input, shape index: {}]   ;;  %s3344_s5 = inlined_call_operand.vmem [shape: bf16[64,64], index: 5, kind: input, shape index: {}]   ;;  %s3345_s6 = inlined_call_operand.vmem [shape: f32[1,64], index: 6, kind: input, shape index: {}]   ;;  %s3346_s7 = inlined_call_operand.vmem [shape: f32[1,64], index: 7, kind: input, shape index: {}]   ;;  %s3347_s8 = inlined_call_operand.<no memory space> [shape: f32[1,1], index: 8, kind: input, shape index: {}]   ;;  %s3348_s9 = inlined_call_operand.hbm [shape: f32[512,128], index: 9, kind: output, shape index: {}]  }
   0x1   :  { %v14_v0 = vstv %s3347_s8 }
   0x2   :  { %15 = vst [vmem:[#allocation2] sm:$0x1] %v14_v0 }
   0x3   :  { %16 = vsyncpa [#allocation4], 0 }
   0x4   :  { %18 = vsyncpa [#allocation4 + $0x1], 0 }
   0x5   :  { %19 = vsyncpa [#allocation5], 0 }
   0x6   :  { %21 = vsyncpa [#allocation5 + $0x1], 0  ;;  %s2666_s11 = smov 0   ;;  %s2668_s12 = smov 0  }
   0x7   :  { %s2670_s13 = smov 0   ;;  %s2672_s14 = smov 0  }
   0x8 LB: > { %s2687_s8 = sadd.s32 4294967295, %s2604_s14   ;;  %s1970_s15 = sadd.s32 4294967294, %s2604_s14   ;;  %s2604_s14 = sphi %s2672_s14, %s3365_s14   ;;  %s2600_s13 = sphi %s2670_s13, %s3364_s13   ;;  %s2596_s12 = sphi %s2668_s12, %s3363_s12   ;;  %s2592_s11 = sphi %s2666_s11, %s3362_s11  }
   0x9   : > { %s2691_s16 = sadd.s32 1, %s2604_s14   ;;  %s34_s17 = sadd.s32 1, %s2600_s13 }
   0xa   : > { %s31_s18 = ssub.s32 %s2604_s14, %s2691_s16  ;;  %p41_p0 = scmp.ne.s32.totalorder %s2600_s13, %s2596_s12 }
   0xb   : > { %p32_p1 = scmp.eq.s32.totalorder %s31_s18, 0  ;;  %p42_p2 = scmp.eq.s32.totalorder %s2604_s14, 0 }
   0xc   : > { %p47_p3 = scmp.ne.s32.totalorder %s2596_s12, %s2592_s11  ;;  %p48_p4 = scmp.eq.s32.totalorder %s2687_s8, 0 }
   0xd   : > { %s2703_s19 = scalar_select %p32_p1, %s2600_s13, %s34_s17  }
   0xe   : > { %p2705_p5 = por %p42_p2, %p41_p0  ;;  %p2709_p6 = por %p48_p4, %p47_p3 }
   0xf   : > { %3351 = sst [smem:[#allocation9_spill]] %s2703_s19  ;;  %p239_p7 = scmp.eq.s32.totalorder %s2687_s8, 1 }
  0x10   : > { %s3353_s21 = scalar_select %p2709_p6, 1, 0 }
  0x11   : > { %p245_p8 = scmp.eq.s32.totalorder %s1970_s15, 1  ;;  %p2307_p10 = scmp.lt.s32.totalorder %s2604_s14, 2 }
  0x12   : > { %p2716_p11 = por %p239_p7, %p41_p0  ;;  %s289_s24 = sand.u32 1, %s2600_s13  }
  0x13   : > { %p2720_p12 = por %p245_p8, %p47_p3  ;;  %s2073_s25 = sshll.u32 %s2604_s14, 11 }
  0x14   : > { %s3354_s22 = scalar_select %p2716_p11, 1, 0 }
  0x15   : > { %s3355_s23 = scalar_select %p2720_p12, 1, 0 }
  0x16   : > { %s1973_s26 = sshll.u32 %s289_s24, 7  ;;  %s2729_s29 = scalar_lea.hbm %s3339_s0, %s2073_s25 }
  0x17   : > { %s293_s30 = scalar_lea.vmem [#allocation3], %s1973_s26  ;;  %p2733_p13 = pnand %p2307_p10, %p2705_p5 }
  0x18   : > { %s300_s10 = sshll.u32 %s293_s30, 4  ;;  %s2739_s17 = scalar_lea.sflag [#allocation4], %s289_s24  ;;  %s2737_s10 = int_to_ptr.vmem [resolvable:$true] %s300_s10 }
  0x19   : > { %s2512_s18 = scalar_lea.hbm %s2729_s29, 2048  ;;  %p2514_p1 = pneg %p2733_p13 }
  0x1a   : > { %p2513_p0 = scmp.ne.s32.totalorder %s2729_s29, %s2512_s18  ;;  %s2517_s26 = scalar_lea.hbm %s3339_s0, 4096 }
  0x1b   : > { %p2518_p4 = scmp.lt.s32.totalorder %s2729_s29, %s3339_s0  ;;  %p2519_p5 = scmp.lt.s32.totalorder %s2517_s26, %s2512_s18 }
  0x1c   : > { %p2515_p2 = pnand %p2514_p1, %p2513_p0 }
  0x1d   : > { %p2520_p7 = por %p2519_p5, %p2518_p4 }
  0x1e   : > { %p2516_p3 = pneg %p2515_p2 }
  0x20   : > { %p2521_p8 = pnand %p2520_p7, %p2516_p3 }
  0x22   : > { %2524 = shalt.err (!%p2521_p8)
}
  0x23   : > { %s2525_s24 = scalar_lea.vmem %s2737_s10, 2048  ;;  %s2606_s30 = smov [#allocation3]  }
  0x24   : > { %p2526_p10 = scmp.ne.s32.totalorder %s2737_s10, %s2525_s24  ;;  %s2530_s19 = sshll.u32 %s2606_s30, 4  ;;  %s2531_s19 = int_to_ptr.vmem [resolvable:$false] %s2530_s19 }
  0x25   : > { %s2532_s25 = scalar_lea.vmem %s2531_s19, 4096  ;;  %p2533_p2 = scmp.lt.s32.totalorder %s2737_s10, %s2531_s19 }
  0x26   : > { %p2528_p9 = pnand %p2526_p10, %p2514_p1  ;;  %p2534_p12 = scmp.lt.s32.totalorder %s2532_s25, %s2525_s24 }
  0x28   : > { %p2529_p0 = pneg %p2528_p9  ;;  %p2535_p11 = por %p2534_p12, %p2533_p2 }
  0x2a   : > { %p2536_p6 = pnand %p2535_p11, %p2529_p0 }
  0x2c   : > { %2539 = shalt.err (!%p2536_p6)
}
  0x2d   : > { %s2607_s18 = smov 64   ;;  %s2608_s27 = smov 4  }
  0x2e   : > { %2302 = dma.hbm_to_vmem [thread:$0]  (!%p2733_p13), %s2729_s29, 2048, %s2737_s10, %s2739_s17, %s2607_s18, %s2607_s18, %s2608_s27  }
  0x2f   : > { %p1976_p9 = scmp.ge.s32.totalorder %s2604_s14, 1  ;;  %p308_p1 = scmp.lt.s32.totalorder %s2604_s14, 3 }
  0x31   : > { %p309_p3 = pnand %p1976_p9, %p308_p1 }
  0x32   : > { %s2763_s19 = sand.u32 (!%p309_p3), 1, %s2596_s12   ;;  %p3357_p6 = scmp.ne.s32.totalorder (!%p309_p3), %s3353_s21, 0 }
  0x33   : > { %312 = sbr.rel (%p309_p3) target bundleno = 1083 (0x43b), region = 56  ;;  %s1977_s26 = sshll.u32 (!%p309_p3), %s2763_s19, 7 }
  0x34   : > { %s315_s20 = scalar_lea.sflag (!%p309_p3), [#allocation4], %s2763_s19  ;;  %s2767_s28 = scalar_lea.vmem (!%p309_p3), [#allocation3], %s1977_s26 }
  0x38   : > { %2583 = dma.done.wait (%p3357_p6), %s315_s20, 2048  }
  0x39   : > { %2585 = vsyncadd (%p3357_p6), %s315_s20, 4294965248  ;;  %v2348_v1 = vld [vmem:[%s3340_s1 + $0x38] sm:$0xff]   ;;  %v2349_v2 = vld [vmem:[%s3340_s1 + $0x30] sm:$0xff]   ;;  %vm1083_vm0 = vcmask 523264   ;;  %s1978_s26 = sshll.u32 %s2763_s19, 8  ;;  %s2074_s29 = sshll.u32 %s2687_s8, 12 }
  0x3a   : > { %2143 = vmatprep.subr.bf16.mxu0 %v2348_v1  ;;  %2279 = vmatprep.subr.bf16.mxu1 %v2348_v1  ;;  %v2350_v3 = vld [vmem:[%s3340_s1 + $0x28] sm:$0xff]   ;;  %v2351_v4 = vld [vmem:[%s3340_s1 + $0x20] sm:$0xff]   ;;  %v2352_v6 = vld [vmem:[%s3340_s1 + $0x18] sm:$0xff]   ;;  %s3193_s20 = scalar_lea.vmem [#allocation6], %s1978_s26  ;;  %s3291_s24 = scalar_lea.hbm %s3348_s9, %s2074_s29 }
  0x3b   : > { %2144 = vmatpush3.bf16.msra.mxu0 %v2348_v1  ;;  %2287 = vmatpush3.bf16.msra.mxu1 %v2348_v1  ;;  %v2356_v5 = vld [vmem:[%s2767_s28] sm:$0xff]   ;;  %v2353_v7 = vld [vmem:[%s3340_s1 + $0x10] sm:$0xff]   ;;  %v2372_v13 = vld [vmem:[%s3342_s3 + $0x38] sm:$0xff]   ;;  %s1897_s10 = sshll.u32 %s3193_s20, 4  ;;  %s1884_s8 = scalar_lea.sflag [#allocation5], %s2763_s19  ;;  %s3293_s10 = int_to_ptr.vmem [resolvable:$true] %s1897_s10 }
  0x3c   : > { %2145 = vmatprep.subr.bf16.mxu0 %v2349_v2  ;;  %2280 = vmatprep.subr.bf16.mxu1 %v2349_v2  ;;  %v2364_v8 = vld [vmem:[%s2767_s28 + $0x40] sm:$0xff]   ;;  %v2357_v11 = vld [vmem:[%s2767_s28 + $0x8] sm:$0xff]   ;;  %v2358_v14 = vld [vmem:[%s2767_s28 + $0x10] sm:$0xff]   ;;  %s2540_s30 = scalar_lea.vmem %s3293_s10, 4096  ;;  %p3358_p12 = scmp.ne.s32.totalorder %s3354_s22, 0 }
  0x3d   : > { %2159 = vmatprep.mubr.bf16.mxu0 %v2356_v5  ;;  %2175 = vmatprep.mubr.bf16.mxu1 %v2364_v8  ;;  %v2354_v9 = vld [vmem:[%s3340_s1 + $0x8] sm:$0xff]   ;;  %v2355_v10 = vld [vmem:[%s3340_s1] sm:$0xff]   ;;  %v2366_v15 = vld [vmem:[%s2767_s28 + $0x50] sm:$0xff]   ;;  %p2541_p11 = scmp.ne.s32.totalorder %s3293_s10, %s2540_s30  ;;  %s2610_s21 = smov [#allocation6]  }
  0x3e   : > { %v2365_v12 = vld [vmem:[%s2767_s28 + $0x48] sm:$0xff]   ;;  %v2359_v18 = vld [vmem:[%s2767_s28 + $0x18] sm:$0xff]   ;;  %v2360_v20 = vld [vmem:[%s2767_s28 + $0x20] sm:$0xff]   ;;  %s2544_s25 = sshll.u32 %s2610_s21, 4  ;;  %s2545_s25 = int_to_ptr.vmem [resolvable:$false] %s2544_s25 }
  0x3f   : > { %2146 = vmatpush3.bf16.msra.mxu0 %v2349_v2  ;;  %2288 = vmatpush3.bf16.msra.mxu1 %v2349_v2  ;;  %v2373_v16 = vld [vmem:[%s3342_s3 + $0x30] sm:$0xff]   ;;  %v2374_v17 = vld [vmem:[%s3342_s3 + $0x28] sm:$0xff]   ;;  %v2367_v19 = vld [vmem:[%s2767_s28 + $0x58] sm:$0xff]   ;;  %p2542_p13 = pnand %p2541_p11, %p3358_p12  ;;  %p2547_p5 = scmp.lt.s32.totalorder %s3293_s10, %s2545_s25 }
  0x40   : > { %2147 = vmatprep.subr.bf16.mxu0 %v2350_v3  ;;  %2281 = vmatprep.subr.bf16.mxu1 %v2350_v3  ;;  %v2368_v21 = vld [vmem:[%s2767_s28 + $0x60] sm:$0xff]   ;;  %v2376_v23 = vld [vmem:[%s3342_s3 + $0x18] sm:$0xff]   ;;  %v2361_v24 = vld [vmem:[%s2767_s28 + $0x28] sm:$0xff]  }
  0x41   : > { %v2375_v22 = vld [vmem:[%s3342_s3 + $0x20] sm:$0xff]   ;;  %v2369_v25 = vld [vmem:[%s2767_s28 + $0x68] sm:$0xff]   ;;  %v2362_v26 = vld [vmem:[%s2767_s28 + $0x30] sm:$0xff]   ;;  %p2543_p4 = pneg %p2542_p13 }
  0x42   : > { %v2370_v27 = vld [vmem:[%s2767_s28 + $0x70] sm:$0xff]   ;;  %v2363_v28 = vld [vmem:[%s2767_s28 + $0x38] sm:$0xff]   ;;  %v2378_v31 = vld [vmem:[%s3342_s3 + $0x8] sm:$0xff]  }
  0x43   : > { %2148 = vmatpush3.bf16.msra.mxu0 %v2350_v3  ;;  %2289 = vmatpush3.bf16.msra.mxu1 %v2350_v3  ;;  %v2371_v29 = vld [vmem:[%s2767_s28 + $0x78] sm:$0xff]   ;;  %v2377_v30 = vld [vmem:[%s3342_s3 + $0x10] sm:$0xff]   ;;  %v2382_v35 = vld [vmem:[%s3344_s5 + $0x8] sm:$0xff]   ;;  %s2546_s28 = scalar_lea.vmem %s2545_s25, 8192 }
  0x44   : > { %2149 = vmatprep.subr.bf16.mxu0 %v2351_v4  ;;  %2282 = vmatprep.subr.bf16.mxu1 %v2351_v4  ;;  %v2379_v32 = vld [vmem:[%s3342_s3] sm:$0xff]   ;;  %v2380_v33 = vld [vmem:[%s3344_s5 + $0x18] sm:$0xff]   ;;  %v2381_v34 = vld [vmem:[%s3344_s5 + $0x10] sm:$0xff]   ;;  %p2548_p7 = scmp.lt.s32.totalorder %s2546_s28, %s2540_s30 }
  0x45   : > { %v2851_v40 = vld [vmem:[%s3341_s2] ss:$0 sm:$0xff] }
  0x46   : > { %p2549_p8 = por %p2548_p7, %p2547_p5 }
  0x47   : > { %2150 = vmatpush3.bf16.msra.mxu0 %v2351_v4  ;;  %2290 = vmatpush3.bf16.msra.mxu1 %v2351_v4 }
  0x48   : > { %2151 = vmatprep.subr.bf16.mxu0 %v2352_v6  ;;  %2283 = vmatprep.subr.bf16.mxu1 %v2352_v6  ;;  %p2550_p10 = pnand %p2549_p8, %p2543_p4 }
  0x4b   : > { %2152 = vmatpush3.bf16.msra.mxu0 %v2352_v6  ;;  %2291 = vmatpush3.bf16.msra.mxu1 %v2352_v6 }
  0x4c   : > { %2153 = vmatprep.subr.bf16.mxu0 %v2353_v7  ;;  %2284 = vmatprep.subr.bf16.mxu1 %v2353_v7 }
  0x4f   : > { %2154 = vmatpush3.bf16.msra.mxu0 %v2353_v7  ;;  %2292 = vmatpush3.bf16.msra.mxu1 %v2353_v7 }
  0x50   : > { %2155 = vmatprep.subr.bf16.mxu0 %v2354_v9  ;;  %2285 = vmatprep.subr.bf16.mxu1 %v2354_v9 }
  0x53   : > { %2156 = vmatpush3.bf16.msra.mxu0 %v2354_v9  ;;  %2293 = vmatpush3.bf16.msra.mxu1 %v2354_v9 }
  0x54   : > { %2157 = vmatprep.subr.bf16.mxu0 %v2355_v10  ;;  %2286 = vmatprep.subr.bf16.mxu1 %v2355_v10 }
  0x57   : > { %2158 = vmatpush3.bf16.msra.mxu0 %v2355_v10  ;;  %2294 = vmatpush3.bf16.msra.mxu1 %v2355_v10 }
  0x58   : > { %2191 = vmatprep.subr.bf16.mxu1 %v2372_v13  ;;  %2239 = vmatprep.subr.bf16.mxu0 %v2380_v33 }
  0x5a   : > { %2160 = vmatmul.mubr.bf16.vlgmr.msra.gmra.mxu0 %v2357_v11  ;;  %2176 = vmatmul.mubr.bf16.vlgmr.msra.gmra.mxu1 %v2365_v12 }
  0x5b   : > { %2163 = vmatprep.mubr.bf16.mxu0 %v2358_v14  ;;  %2179 = vmatprep.mubr.bf16.mxu1 %v2366_v15 }
  0x5c   : > { %2192 = vmatpush3.bf16.msra.mxu1 %v2372_v13  ;;  %2240 = vmatpush3.bf16.msra.mxu0 %v2380_v33 }
  0x5d   : > { %2193 = vmatprep.subr.bf16.mxu1 %v2373_v16  ;;  %2241 = vmatprep.subr.bf16.mxu0 %v2381_v34 }
  0x60   : > { %2194 = vmatpush3.bf16.msra.mxu1 %v2373_v16  ;;  %2242 = vmatpush3.bf16.msra.mxu0 %v2381_v34 }
  0x61   : > { %2195 = vmatprep.subr.bf16.mxu1 %v2374_v17  ;;  %2243 = vmatprep.subr.bf16.mxu0 %v2382_v35 }
  0x62   : > { %2164 = vmatmul.mubr.bf16.gmra.mxu0 %v2359_v18  ;;  %2180 = vmatmul.mubr.bf16.gmra.mxu1 %v2367_v19 }
  0x63   : > { %2167 = vmatprep.mubr.bf16.mxu0 %v2360_v20  ;;  %2183 = vmatprep.mubr.bf16.mxu1 %v2368_v21 }
  0x64   : > { %2196 = vmatpush3.bf16.msra.mxu1 %v2374_v17  ;;  %2244 = vmatpush3.bf16.msra.mxu0 %v2382_v35 }
  0x65   : > { %2197 = vmatprep.subr.bf16.mxu1 %v2375_v22 }
  0x68   : > { %2198 = vmatpush3.bf16.msra.mxu1 %v2375_v22 }
  0x69   : > { %2199 = vmatprep.subr.bf16.mxu1 %v2376_v23 }
  0x6a   : > { %2168 = vmatmul.mubr.bf16.gmra.mxu0 %v2361_v24  ;;  %2184 = vmatmul.mubr.bf16.gmra.mxu1 %v2369_v25 }
  0x6b   : > { %2171 = vmatprep.mubr.bf16.mxu0 %v2362_v26  ;;  %2187 = vmatprep.mubr.bf16.mxu1 %v2370_v27 }
  0x6c   : > { %2200 = vmatpush3.bf16.msra.mxu1 %v2376_v23 }
  0x6d   : > { %2201 = vmatprep.subr.bf16.mxu1 %v2377_v30 }
  0x70   : > { %2202 = vmatpush3.bf16.msra.mxu1 %v2377_v30 }
  0x71   : > { %2203 = vmatprep.subr.bf16.mxu1 %v2378_v31 }
  0x72   : > { %2172 = vmatmul.mubr.bf16.gmra.mxu0 %v2363_v28  ;;  %2188 = vmatmul.mubr.bf16.gmra.mxu1 %v2371_v29 }
  0x74   : > { %2204 = vmatpush3.bf16.msra.mxu1 %v2378_v31 }
  0x75   : > { %2205 = vmatprep.subr.bf16.mxu1 %v2379_v32 }
  0x78   : > { %2206 = vmatpush3.bf16.msra.mxu1 %v2379_v32 }
 0x11a   : > { %v2161_v36 = vpop.f32.mrf.mxu0  ;;  %v2846_v37 = vpop.f32.mrf.mxu1 }
 0x11b   : > { %v598_v45 = vadd.f32 %v2161_v36, %v2851_v40 }
 0x11c   : > { %v589_v38 = vpop.f32.mrf.mxu0  ;;  %v653_v39 = vpop.f32.mrf.mxu1 }
 0x11d   : > { %v590_v43 = vadd.f32 %v2851_v40, %v589_v38  ;;  %v718_v54 = vmax.f32 %v598_v45, 0.0  ;;  %v654_v26 = vadd.f32 %v2851_v40, %v653_v39 }
 0x11e   : > { %v2162_v41 = vpop.f32.mrf.mxu0  ;;  %v2853_v42 = vpop.f32.mrf.mxu1 }
 0x11f   : > { %v601_v44 = vadd.f32 %v2162_v41, %v2851_v40  ;;  %v716_v52 = vmax.f32 %v590_v43, 0.0  ;;  %v732_v36 = vmax.f32 %v654_v26, 0.0 }
 0x120   : > { %v592_v46 = vpop.f32.mrf.mxu0  ;;  %v656_v47 = vpop.f32.mrf.mxu1 }
 0x121   : > { %v593_v48 = vadd.f32 %v2851_v40, %v592_v46  ;;  %v719_v49 = vmax.f32 %v601_v44, 0.0  ;;  %v657_v27 = vadd.f32 %v2851_v40, %v656_v47 }
 0x122   : > { %v2165_v50 = vpop.f32.mrf.mxu0  ;;  %v2859_v51 = vpop.f32.mrf.mxu1 }
 0x123   : > { %v717_v53 = vmax.f32 %v593_v48, 0.0  ;;  %v749_v58 = vpack.c.bf16 %v719_v49, %v718_v54  ;;  %v614_v59 = vadd.f32 %v2165_v50, %v2851_v40  ;;  %v733_v38 = vmax.f32 %v657_v27, 0.0 }
 0x124   : > { %v605_v55 = vpop.f32.mrf.mxu0  ;;  %v669_v56 = vpop.f32.mrf.mxu1 }
 0x125   : > { %v748_v57 = vpack.c.bf16 %v717_v53, %v716_v52  ;;  %v606_v62 = vadd.f32 %v2851_v40, %v605_v55  ;;  %v722_v2 = vmax.f32 %v614_v59, 0.0  ;;  %v756_v47 = vpack.c.bf16 %v733_v38, %v732_v36 }
 0x126   : > { %v2166_v60 = vpop.f32.mrf.mxu0  ;;  %v2862_v61 = vpop.f32.mrf.mxu1  ;;  %v670_v48 = vadd.f32 %v2851_v40, %v669_v56  ;;  %v662_v52 = vadd.f32 %v2846_v37, %v2851_v40  ;;  %v665_v53 = vadd.f32 %v2853_v42, %v2851_v40  ;;  %v678_v37 = vadd.f32 %v2859_v51, %v2851_v40 }
 0x127   : > { %v617_v63 = vadd.f32 %v2166_v60, %v2851_v40  ;;  %2207 = vmatprep.mubr.bf16.mxu1 %v748_v57  ;;  %v720_v6 = vmax.f32 %v606_v62, 0.0  ;;  %v681_v42 = vadd.f32 %v2862_v61, %v2851_v40 }
 0x128   : > { %v608_v0 = vpop.f32.mrf.mxu0  ;;  %2208 = vmatmul.mubr.bf16.vlgmr.msra.gmra.mxu1 %v749_v58  ;;  %v672_v5 = vpop.f32.mrf.mxu1  ;;  %v736_v55 = vmax.f32 %v670_v48, 0.0  ;;  %v734_v58 = vmax.f32 %v662_v52, 0.0  ;;  %v735_v59 = vmax.f32 %v665_v53, 0.0 }
 0x129   : > { %v609_v1 = vadd.f32 %v2851_v40, %v608_v0  ;;  %v723_v3 = vmax.f32 %v617_v63, 0.0  ;;  %v673_v49 = vadd.f32 %v2851_v40, %v672_v5  ;;  %v739_v5 = vmax.f32 %v681_v42, 0.0 }
 0x12a   : > { %v2169_v4 = vpop.f32.mrf.mxu0  ;;  %v2868_v13 = vpop.f32.mrf.mxu1  ;;  %v757_v0 = vpack.c.bf16 %v735_v59, %v734_v58 }
 0x12b   : > { %v721_v7 = vmax.f32 %v609_v1, 0.0  ;;  %v751_v10 = vpack.c.bf16 %v723_v3, %v722_v2  ;;  %v630_v11 = vadd.f32 %v2169_v4, %v2851_v40  ;;  %v737_v57 = vmax.f32 %v673_v49, 0.0 }
 0x12c   : > { %v621_v8 = vpop.f32.mrf.mxu0  ;;  %v685_v21 = vpop.f32.mrf.mxu1  ;;  %v738_v4 = vmax.f32 %v678_v37, 0.0  ;;  %v694_v51 = vadd.f32 %v2868_v13, %v2851_v40  ;;  %v2383_v13 = vld [vmem:[%s3344_s5] sm:$0xff]  }
 0x12d   : > { %v750_v9 = vpack.c.bf16 %v721_v7, %v720_v6  ;;  %v622_v14 = vadd.f32 %v2851_v40, %v621_v8  ;;  %v726_v18 = vmax.f32 %v630_v11, 0.0  ;;  %v758_v62 = vpack.c.bf16 %v737_v57, %v736_v55  ;;  %2245 = vmatprep.subr.bf16.mxu0 %v2383_v13 }
 0x12e   : > { %v2170_v12 = vpop.f32.mrf.mxu0  ;;  %v2186_v31 = vpop.f32.mrf.mxu1  ;;  %v686_v56 = vadd.f32 %v2851_v40, %v685_v21  ;;  %2246 = vmatpush3.bf16.msra.mxu0 %v2383_v13 }
 0x12f   : > { %v633_v15 = vadd.f32 %v2170_v12, %v2851_v40  ;;  %2211 = vmatprep.mubr.bf16.mxu1 %v750_v9  ;;  %v724_v22 = vmax.f32 %v622_v14, 0.0  ;;  %v697_v11 = vadd.f32 %v2186_v31, %v2851_v40  ;;  %v742_v14 = vmax.f32 %v694_v51, 0.0 }
 0x130   : > { %v624_v16 = vpop.f32.mrf.mxu0  ;;  %2212 = vmatmul.mubr.bf16.gmra.mxu1 %v751_v10  ;;  %v688_v43 = vpop.f32.mrf.mxu1  ;;  %v740_v2 = vmax.f32 %v686_v56, 0.0  ;;  %v759_v10 = vpack.c.bf16 %v739_v5, %v738_v4 }
 0x131   : > { %v625_v17 = vadd.f32 %v2851_v40, %v624_v16  ;;  %v727_v19 = vmax.f32 %v633_v15, 0.0  ;;  %v689_v63 = vadd.f32 %v2851_v40, %v688_v43  ;;  %v743_v15 = vmax.f32 %v697_v11, 0.0 }
 0x132   : > { %v2173_v20 = vpop.f32.mrf.mxu0  ;;  %v2189_v54 = vpop.f32.mrf.mxu1 }
 0x133   : > { %v725_v23 = vmax.f32 %v625_v17, 0.0  ;;  %v753_v28 = vpack.c.bf16 %v727_v19, %v726_v18  ;;  %v646_v29 = vadd.f32 %v2173_v20, %v2851_v40  ;;  %v741_v3 = vmax.f32 %v689_v63, 0.0 }
 0x134   : > { %v637_v24 = vpop.f32.mrf.mxu0  ;;  %v701_v60 = vpop.f32.mrf.mxu1  ;;  %v761_v17 = vpack.c.bf16 %v743_v15, %v742_v14  ;;  %v710_v18 = vadd.f32 %v2189_v54, %v2851_v40 }
 0x135   : > { %v752_v25 = vpack.c.bf16 %v725_v23, %v724_v22  ;;  %v638_v32 = vadd.f32 %v2851_v40, %v637_v24  ;;  %v730_v41 = vmax.f32 %v646_v29, 0.0  ;;  %v760_v7 = vpack.c.bf16 %v741_v3, %v740_v2 }
 0x136   : > { %v2174_v30 = vpop.f32.mrf.mxu0  ;;  %v2190_v1 = vpop.f32.mrf.mxu1  ;;  %v702_v8 = vadd.f32 %v2851_v40, %v701_v60  ;;  %v746_v20 = vmax.f32 %v710_v18, 0.0 }
 0x137   : > { %v649_v33 = vadd.f32 %v2174_v30, %v2851_v40  ;;  %2215 = vmatprep.mubr.bf16.mxu1 %v752_v25  ;;  %v728_v44 = vmax.f32 %v638_v32, 0.0  ;;  %v713_v19 = vadd.f32 %v2190_v1, %v2851_v40  ;;  %v2904_v25 = vld [vmem:[%s3343_s4] ss:$0 sm:$0xff] }
 0x138   : > { %v640_v34 = vpop.f32.mrf.mxu0  ;;  %2216 = vmatmul.mubr.bf16.gmra.mxu1 %v753_v28  ;;  %v704_v6 = vpop.f32.mrf.mxu1  ;;  %v744_v61 = vmax.f32 %v702_v8, 0.0 }
 0x139   : > { %v641_v35 = vadd.f32 %v2851_v40, %v640_v34  ;;  %v731_v39 = vmax.f32 %v649_v33, 0.0  ;;  %v705_v9 = vadd.f32 %v2851_v40, %v704_v6  ;;  %v747_v21 = vmax.f32 %v713_v19, 0.0 }
 0x13b   : > { %v729_v45 = vmax.f32 %v641_v35, 0.0  ;;  %v755_v50 = vpack.c.bf16 %v731_v39, %v730_v41  ;;  %v745_v12 = vmax.f32 %v705_v9, 0.0  ;;  %v763_v22 = vpack.c.bf16 %v747_v21, %v746_v20 }
 0x13d   : > { %v754_v46 = vpack.c.bf16 %v729_v45, %v728_v44  ;;  %v762_v16 = vpack.c.bf16 %v745_v12, %v744_v61 }
 0x13f   : > { %2219 = vmatprep.mubr.bf16.mxu1 %v754_v46 }
 0x140   : > { %2220 = vmatmul.mubr.bf16.gmra.mxu1 %v755_v50 }
 0x141   : > { %2223 = vmatprep.mubr.bf16.mxu1 %v756_v47 }
 0x148   : > { %2224 = vmatmul.mubr.bf16.gmra.mxu1 %v757_v0 }
 0x149   : > { %2227 = vmatprep.mubr.bf16.mxu1 %v758_v62 }
 0x150   : > { %2228 = vmatmul.mubr.bf16.gmra.mxu1 %v759_v10 }
 0x151   : > { %2231 = vmatprep.mubr.bf16.mxu1 %v760_v7 }
 0x158   : > { %2232 = vmatmul.mubr.bf16.gmra.mxu1 %v761_v17 }
 0x159   : > { %2235 = vmatprep.mubr.bf16.mxu1 %v762_v16 }
 0x160   : > { %2236 = vmatmul.mubr.bf16.gmra.mxu1 %v763_v22 }
 0x1e8   : > { %v2209_v23 = vpop.f32.mrf.mxu1 }
 0x1e9   : > { %v878_v28 = vadd.f32 %v2209_v23, %v2904_v25 }
 0x1ea   : > { %v869_v24 = vpop.f32.mrf.mxu1 }
 0x1eb   : > { %v870_v26 = vadd.f32 %v2904_v25, %v869_v24  ;;  %v998_v35 = vmax.f32 %v878_v28, 0.0 }
 0x1ec   : > { %v2210_v40 = vpop.f32.mrf.mxu1 }
 0x1ed   : > { %v881_v27 = vadd.f32 %v2210_v40, %v2904_v25  ;;  %v996_v33 = vmax.f32 %v870_v26, 0.0 }
 0x1ee   : > { %v872_v29 = vpop.f32.mrf.mxu1 }
 0x1ef   : > { %v873_v30 = vadd.f32 %v2904_v25, %v872_v29  ;;  %v999_v31 = vmax.f32 %v881_v27, 0.0 }
 0x1f0   : > { %v2213_v32 = vpop.f32.mrf.mxu1 }
 0x1f1   : > { %v997_v34 = vmax.f32 %v873_v30, 0.0  ;;  %v1029_v41 = vpack.c.bf16 %v999_v31, %v998_v35  ;;  %v894_v45 = vadd.f32 %v2213_v32, %v2904_v25 }
 0x1f2   : > { %v885_v36 = vpop.f32.mrf.mxu1 }
 0x1f3   : > { %v1028_v38 = vpack.c.bf16 %v997_v34, %v996_v33  ;;  %v886_v43 = vadd.f32 %v2904_v25, %v885_v36  ;;  %v1002_v53 = vmax.f32 %v894_v45, 0.0 }
 0x1f4   : > { %v2214_v39 = vpop.f32.mrf.mxu1 }
 0x1f5   : > { %v897_v44 = vadd.f32 %v2214_v39, %v2904_v25  ;;  %2247 = vmatprep.mubr.msk.bf16.mxu0 %vm1083_vm0, %v1028_v38  ;;  %v1000_v50 = vmax.f32 %v886_v43, 0.0 }
 0x1f6   : > { %v888_v46 = vpop.f32.mrf.mxu1  ;;  %2248 = vmatmul.mubr.msk.bf16.vlgmr.msra.gmra.mxu0 %vm1083_vm0, %v1029_v41 }
 0x1f7   : > { %v889_v47 = vadd.f32 %v2904_v25, %v888_v46  ;;  %v1003_v48 = vmax.f32 %v897_v44, 0.0 }
 0x1f8   : > { %v2217_v49 = vpop.f32.mrf.mxu1 }
 0x1f9   : > { %v1001_v52 = vmax.f32 %v889_v47, 0.0  ;;  %v1031_v57 = vpack.c.bf16 %v1003_v48, %v1002_v53  ;;  %v910_v62 = vadd.f32 %v2217_v49, %v2904_v25 }
 0x1fa   : > { %v901_v54 = vpop.f32.mrf.mxu1 }
 0x1fb   : > { %v1030_v55 = vpack.c.bf16 %v1001_v52, %v1000_v50  ;;  %v902_v59 = vadd.f32 %v2904_v25, %v901_v54  ;;  %v1006_v2 = vmax.f32 %v910_v62, 0.0 }
 0x1fc   : > { %v2218_v58 = vpop.f32.mrf.mxu1 }
 0x1fd   : > { %v913_v60 = vadd.f32 %v2218_v58, %v2904_v25  ;;  %2251 = vmatprep.mubr.msk.bf16.mxu0 %vm1083_vm0, %v1030_v55  ;;  %v1004_v42 = vmax.f32 %v902_v59, 0.0 }
 0x1fe   : > { %v904_v56 = vpop.f32.mrf.mxu1  ;;  %2252 = vmatmul.mubr.msk.bf16.gmra.mxu0 %vm1083_vm0, %v1031_v57 }
 0x1ff   : > { %v905_v63 = vadd.f32 %v2904_v25, %v904_v56  ;;  %v1007_v0 = vmax.f32 %v913_v60, 0.0 }
 0x200   : > { %v2221_v37 = vpop.f32.mrf.mxu1 }
 0x201   : > { %v1005_v1 = vmax.f32 %v905_v63, 0.0  ;;  %v1033_v5 = vpack.c.bf16 %v1007_v0, %v1006_v2  ;;  %v926_v9 = vadd.f32 %v2221_v37, %v2904_v25 }
 0x202   : > { %v917_v3 = vpop.f32.mrf.mxu1 }
 0x203   : > { %v1032_v4 = vpack.c.bf16 %v1005_v1, %v1004_v42  ;;  %v918_v7 = vadd.f32 %v2904_v25, %v917_v3  ;;  %v1010_v15 = vmax.f32 %v926_v9, 0.0 }
 0x204   : > { %v2222_v6 = vpop.f32.mrf.mxu1 }
 0x205   : > { %v929_v8 = vadd.f32 %v2222_v6, %v2904_v25  ;;  %2255 = vmatprep.mubr.msk.bf16.mxu0 %vm1083_vm0, %v1032_v4  ;;  %v1008_v12 = vmax.f32 %v918_v7, 0.0 }
 0x206   : > { %v920_v10 = vpop.f32.mrf.mxu1  ;;  %2256 = vmatmul.mubr.msk.bf16.gmra.mxu0 %vm1083_vm0, %v1033_v5 }
 0x207   : > { %v921_v51 = vadd.f32 %v2904_v25, %v920_v10  ;;  %v1011_v11 = vmax.f32 %v929_v8, 0.0 }
 0x208   : > { %v2225_v61 = vpop.f32.mrf.mxu1 }
 0x209   : > { %v1009_v14 = vmax.f32 %v921_v51, 0.0  ;;  %v1035_v18 = vpack.c.bf16 %v1011_v11, %v1010_v15  ;;  %v942_v22 = vadd.f32 %v2225_v61, %v2904_v25  ;;  %v2957_v51 = vld [vmem:[%s3345_s6] ss:$0 sm:$0xff] }
 0x20a   : > { %v933_v16 = vpop.f32.mrf.mxu1 }
 0x20b   : > { %v1034_v17 = vpack.c.bf16 %v1009_v14, %v1008_v12  ;;  %v934_v20 = vadd.f32 %v2904_v25, %v933_v16  ;;  %v1014_v28 = vmax.f32 %v942_v22, 0.0 }
 0x20c   : > { %v2226_v19 = vpop.f32.mrf.mxu1 }
 0x20d   : > { %v945_v21 = vadd.f32 %v2226_v19, %v2904_v25  ;;  %2259 = vmatprep.mubr.msk.bf16.mxu0 %vm1083_vm0, %v1034_v17  ;;  %v1012_v26 = vmax.f32 %v934_v20, 0.0 }
 0x20e   : > { %v936_v13 = vpop.f32.mrf.mxu1  ;;  %2260 = vmatmul.mubr.msk.bf16.gmra.mxu0 %vm1083_vm0, %v1035_v18 }
 0x20f   : > { %v937_v23 = vadd.f32 %v2904_v25, %v936_v13  ;;  %v1015_v24 = vmax.f32 %v945_v21, 0.0 }
 0x210   : > { %v2229_v40 = vpop.f32.mrf.mxu1 }
 0x211   : > { %v1013_v27 = vmax.f32 %v937_v23, 0.0  ;;  %v1037_v31 = vpack.c.bf16 %v1015_v24, %v1014_v28  ;;  %v958_v35 = vadd.f32 %v2229_v40, %v2904_v25 }
 0x212   : > { %v949_v29 = vpop.f32.mrf.mxu1 }
 0x213   : > { %v1036_v30 = vpack.c.bf16 %v1013_v27, %v1012_v26  ;;  %v950_v33 = vadd.f32 %v2904_v25, %v949_v29  ;;  %v1018_v45 = vmax.f32 %v958_v35, 0.0 }
 0x214   : > { %v2230_v32 = vpop.f32.mrf.mxu1 }
 0x215   : > { %v961_v34 = vadd.f32 %v2230_v32, %v2904_v25  ;;  %2263 = vmatprep.mubr.msk.bf16.mxu0 %vm1083_vm0, %v1036_v30  ;;  %v1016_v43 = vmax.f32 %v950_v33, 0.0 }
 0x216   : > { %v952_v36 = vpop.f32.mrf.mxu1  ;;  %2264 = vmatmul.mubr.msk.bf16.gmra.mxu0 %vm1083_vm0, %v1037_v31 }
 0x217   : > { %v953_v38 = vadd.f32 %v2904_v25, %v952_v36  ;;  %v1019_v41 = vmax.f32 %v961_v34, 0.0 }
 0x218   : > { %v2233_v39 = vpop.f32.mrf.mxu1 }
 0x219   : > { %v1017_v44 = vmax.f32 %v953_v38, 0.0  ;;  %v1039_v48 = vpack.c.bf16 %v1019_v41, %v1018_v45  ;;  %v974_v53 = vadd.f32 %v2233_v39, %v2904_v25 }
 0x21a   : > { %v965_v46 = vpop.f32.mrf.mxu1 }
 0x21b   : > { %v1038_v47 = vpack.c.bf16 %v1017_v44, %v1016_v43  ;;  %v966_v50 = vadd.f32 %v2904_v25, %v965_v46  ;;  %v1022_v62 = vmax.f32 %v974_v53, 0.0 }
 0x21c   : > { %v2234_v49 = vpop.f32.mrf.mxu1 }
 0x21d   : > { %v977_v52 = vadd.f32 %v2234_v49, %v2904_v25  ;;  %2267 = vmatprep.mubr.msk.bf16.mxu0 %vm1083_vm0, %v1038_v47  ;;  %v1020_v59 = vmax.f32 %v966_v50, 0.0 }
 0x21e   : > { %v968_v54 = vpop.f32.mrf.mxu1  ;;  %2268 = vmatmul.mubr.msk.bf16.gmra.mxu0 %vm1083_vm0, %v1039_v48 }
 0x21f   : > { %v969_v55 = vadd.f32 %v2904_v25, %v968_v54  ;;  %v1023_v57 = vmax.f32 %v977_v52, 0.0 }
 0x220   : > { %v2237_v58 = vpop.f32.mrf.mxu1 }
 0x221   : > { %v1021_v60 = vmax.f32 %v969_v55, 0.0  ;;  %v1041_v0 = vpack.c.bf16 %v1023_v57, %v1022_v62  ;;  %v990_v2 = vadd.f32 %v2237_v58, %v2904_v25 }
 0x222   : > { %v981_v56 = vpop.f32.mrf.mxu1 }
 0x223   : > { %v1040_v63 = vpack.c.bf16 %v1021_v60, %v1020_v59  ;;  %v982_v42 = vadd.f32 %v2904_v25, %v981_v56  ;;  %v1026_v8 = vmax.f32 %v990_v2, 0.0 }
 0x224   : > { %v2238_v37 = vpop.f32.mrf.mxu1 }
 0x225   : > { %v993_v1 = vadd.f32 %v2238_v37, %v2904_v25  ;;  %2271 = vmatprep.mubr.msk.bf16.mxu0 %vm1083_vm0, %v1040_v63  ;;  %v1024_v6 = vmax.f32 %v982_v42, 0.0 }
 0x226   : > { %v984_v3 = vpop.f32.mrf.mxu1  ;;  %2272 = vmatmul.mubr.msk.bf16.gmra.mxu0 %vm1083_vm0, %v1041_v0 }
 0x227   : > { %v985_v4 = vadd.f32 %v2904_v25, %v984_v3  ;;  %v1027_v5 = vmax.f32 %v993_v1, 0.0  ;;  %v2962_v25 = vld [vmem:[%s3346_s7] ss:$0 sm:$0xff] }
 0x229   : > { %v1025_v7 = vmax.f32 %v985_v4, 0.0  ;;  %v1043_v10 = vpack.c.bf16 %v1027_v5, %v1026_v8 }
 0x22b   : > { %v1042_v9 = vpack.c.bf16 %v1025_v7, %v1024_v6 }
 0x22d   : > { %2275 = vmatprep.mubr.msk.bf16.mxu0 %vm1083_vm0, %v1042_v9 }
 0x22e   : > { %2276 = vmatmul.mubr.msk.bf16.gmra.mxu0 %vm1083_vm0, %v1043_v10 }
 0x2b6   : > { %v2249_v11 = vpop.f32.mrf.mxu0 }
 0x2b7   : > { %v2965_v61 = vadd.f32 %v2249_v11, %v2957_v51 }
 0x2b8   : > { %v1166_v12 = vpop.f32.mrf.mxu0 }
 0x2b9   : > { %v2968_v14 = vadd.f32 %v2957_v51, %v1166_v12  ;;  %v1302_v15 = vmul.f32 %v2962_v25, %v2965_v61 }
 0x2ba   : > { %v2250_v16 = vpop.f32.mrf.mxu0 }
 0x2bb   : > { %v2973_v17 = vadd.f32 %v2250_v16, %v2957_v51  ;;  %v1338_v18 = vsel %vm1083_vm0, %v1302_v15, 0.0  ;;  %v1300_v19 = vmul.f32 %v2962_v25, %v2968_v14 }
 0x2bc   : > { %1339 = vadd.xlane.f32.xlu1 %v1338_v18  ;;  %v1169_v20 = vpop.f32.mrf.mxu0 }
 0x2bd   : > { %v2979_v21 = vadd.f32 %v2957_v51, %v1169_v20  ;;  %v1332_v22 = vsel %vm1083_vm0, %v1300_v19, 0.0  ;;  %v1303_v13 = vmul.f32 %v2962_v25, %v2973_v17 }
 0x2be   : > { %v2253_v23 = vpop.f32.mrf.mxu0  ;;  %1333 = vadd.xlane.f32.xlu0 %v1332_v22 }
 0x2bf   : > { %v2985_v24 = vadd.f32 %v2253_v23, %v2957_v51  ;;  %v1341_v40 = vsel %vm1083_vm0, %v1303_v13, 0.0  ;;  %v1301_v26 = vmul.f32 %v2962_v25, %v2979_v21 }
 0x2c0   : > { %1342 = vadd.xlane.f32.xlu1 %v1341_v40  ;;  %v1182_v27 = vpop.f32.mrf.mxu0 }
 0x2c1   : > { %v2991_v28 = vadd.f32 %v2957_v51, %v1182_v27  ;;  %v1335_v29 = vsel %vm1083_vm0, %v1301_v26, 0.0  ;;  %v1306_v30 = vmul.f32 %v2962_v25, %v2985_v24 }
 0x2c2   : > { %v2254_v31 = vpop.f32.mrf.mxu0  ;;  %1336 = vadd.xlane.f32.xlu0 %v1335_v29 }
 0x2c3   : > { %v2997_v32 = vadd.f32 %v2254_v31, %v2957_v51  ;;  %v1350_v35 = vsel %vm1083_vm0, %v1306_v30, 0.0  ;;  %v1304_v38 = vmul.f32 %v2962_v25, %v2991_v28 }
 0x2c4   : > { %v1185_v33 = vpop.f32.mrf.mxu0 }
 0x2c5   : > { %v3000_v34 = vadd.f32 %v2957_v51, %v1185_v33  ;;  %v1307_v36 = vmul.f32 %v2962_v25, %v2997_v32  ;;  %v1344_v47 = vsel %vm1083_vm0, %v1304_v38, 0.0 }
 0x2c6   : > { %v2257_v41 = vpop.f32.mrf.mxu0  ;;  %1351 = vadd.xlane.f32.xlu0 %v1350_v35 }
 0x2c7   : > { %v3008_v39 = vadd.f32 %v2257_v41, %v2957_v51  ;;  %v1353_v43 = vsel %vm1083_vm0, %v1307_v36, 0.0  ;;  %v1305_v44 = vmul.f32 %v2962_v25, %v3000_v34 }
 0x2c8   : > { %1354 = vadd.xlane.f32.xlu1 %v1353_v43  ;;  %v1198_v45 = vpop.f32.mrf.mxu0 }
 0x2c9   : > { %v3014_v46 = vadd.f32 %v2957_v51, %v1198_v45  ;;  %v1310_v48 = vmul.f32 %v2962_v25, %v3008_v39  ;;  %v1347_v52 = vsel %vm1083_vm0, %v1305_v44, 0.0 }
 0x2ca   : > { %v2258_v49 = vpop.f32.mrf.mxu0  ;;  %1345 = vadd.xlane.f32.xlu0 %v1344_v47 }
 0x2cb   : > { %v3020_v50 = vadd.f32 %v2258_v49, %v2957_v51  ;;  %v1362_v55 = vsel %vm1083_vm0, %v1310_v48, 0.0  ;;  %v1308_v58 = vmul.f32 %v2962_v25, %v3014_v46 }
 0x2cc   : > { %v1201_v53 = vpop.f32.mrf.mxu0  ;;  %1348 = vadd.xlane.f32.xlu1 %v1347_v52 }
 0x2cd   : > { %v3024_v54 = vadd.f32 %v2957_v51, %v1201_v53  ;;  %v1311_v57 = vmul.f32 %v2962_v25, %v3020_v50  ;;  %v1356_v37 = vsel %vm1083_vm0, %v1308_v58, 0.0 }
 0x2ce   : > { %v2261_v59 = vpop.f32.mrf.mxu0  ;;  %1363 = vadd.xlane.f32.xlu0 %v1362_v55 }
 0x2cf   : > { %v3032_v60 = vadd.f32 %v2261_v59, %v2957_v51  ;;  %v1365_v62 = vsel %vm1083_vm0, %v1311_v57, 0.0  ;;  %v1309_v56 = vmul.f32 %v2962_v25, %v3024_v54 }
 0x2d0   : > { %v1214_v63 = vpop.f32.mrf.mxu0  ;;  %1366 = vadd.xlane.f32.xlu1 %v1365_v62 }
 0x2d1   : > { %v3038_v0 = vadd.f32 %v2957_v51, %v1214_v63  ;;  %v1314_v42 = vmul.f32 %v2962_v25, %v3032_v60  ;;  %v1359_v3 = vsel %vm1083_vm0, %v1309_v56, 0.0  ;;  %v2609_v63 = vmov 0  }
 0x2d2   : > { %v2262_v1 = vpop.f32.mrf.mxu0  ;;  %1357 = vadd.xlane.f32.xlu0 %v1356_v37  ;;  %2346 = vset.pattern.permute.xlu1 %v2609_v63 }
 0x2d3   : > { %v3044_v2 = vadd.f32 %v2262_v1, %v2957_v51  ;;  %v1374_v6 = vsel %vm1083_vm0, %v1314_v42, 0.0  ;;  %v1312_v8 = vmul.f32 %v2962_v25, %v3038_v0  ;;  %2347 = vset.pattern.permute.xlu0 %v2609_v63 }
 0x2d4   : > { %v1217_v4 = vpop.f32.mrf.mxu0  ;;  %1360 = vadd.xlane.f32.xlu1 %v1359_v3 }
 0x2d5   : > { %v3048_v5 = vadd.f32 %v2957_v51, %v1217_v4  ;;  %v1315_v7 = vmul.f32 %v2962_v25, %v3044_v2  ;;  %v1368_v18 = vsel %vm1083_vm0, %v1312_v8, 0.0 }
 0x2d6   : > { %v2265_v9 = vpop.f32.mrf.mxu0  ;;  %1375 = vadd.xlane.f32.xlu0 %v1374_v6 }
 0x2d7   : > { %v3056_v10 = vadd.f32 %v2265_v9, %v2957_v51  ;;  %v1377_v11 = vsel %vm1083_vm0, %v1315_v7, 0.0  ;;  %v1313_v12 = vmul.f32 %v2962_v25, %v3048_v5 }
 0x2d8   : > { %v1230_v15 = vpop.f32.mrf.mxu0  ;;  %1378 = vadd.xlane.f32.xlu1 %v1377_v11 }
 0x2d9   : > { %v3062_v16 = vadd.f32 %v2957_v51, %v1230_v15  ;;  %v1318_v19 = vmul.f32 %v2962_v25, %v3056_v10  ;;  %v1371_v13 = vsel %vm1083_vm0, %v1313_v12, 0.0 }
 0x2da   : > { %v2266_v20 = vpop.f32.mrf.mxu0  ;;  %1369 = vadd.xlane.f32.xlu0 %v1368_v18 }
 0x2db   : > { %v3068_v22 = vadd.f32 %v2266_v20, %v2957_v51  ;;  %v1386_v26 = vsel %vm1083_vm0, %v1318_v19, 0.0  ;;  %v1316_v29 = vmul.f32 %v2962_v25, %v3062_v16 }
 0x2dc   : > { %v1233_v23 = vpop.f32.mrf.mxu0  ;;  %1372 = vadd.xlane.f32.xlu1 %v1371_v13 }
 0x2dd   : > { %v3072_v40 = vadd.f32 %v2957_v51, %v1233_v23  ;;  %v1319_v27 = vmul.f32 %v2962_v25, %v3068_v22  ;;  %v1380_v41 = vsel %vm1083_vm0, %v1316_v29, 0.0 }
 0x2de   : > { %v2269_v30 = vpop.f32.mrf.mxu0  ;;  %1387 = vadd.xlane.f32.xlu0 %v1386_v26 }
 0x2df   : > { %v3080_v31 = vadd.f32 %v2269_v30, %v2957_v51  ;;  %v1389_v33 = vsel %vm1083_vm0, %v1319_v27, 0.0  ;;  %v1317_v35 = vmul.f32 %v2962_v25, %v3072_v40 }
 0x2e0   : > { %v1246_v36 = vpop.f32.mrf.mxu0  ;;  %1390 = vadd.xlane.f32.xlu1 %v1389_v33 }
 0x2e1   : > { %v3086_v38 = vadd.f32 %v2957_v51, %v1246_v36  ;;  %v1322_v43 = vmul.f32 %v2962_v25, %v3080_v31  ;;  %v1383_v47 = vsel %vm1083_vm0, %v1317_v35, 0.0 }
 0x2e2   : > { %v2270_v44 = vpop.f32.mrf.mxu0  ;;  %1381 = vadd.xlane.f32.xlu0 %v1380_v41 }
 0x2e3   : > { %v3092_v45 = vadd.f32 %v2270_v44, %v2957_v51  ;;  %v1398_v52 = vsel %vm1083_vm0, %v1322_v43, 0.0  ;;  %v1320_v55 = vmul.f32 %v2962_v25, %v3086_v38 }
 0x2e4   : > { %v1249_v48 = vpop.f32.mrf.mxu0  ;;  %1384 = vadd.xlane.f32.xlu1 %v1383_v47 }
 0x2e5   : > { %v3096_v49 = vadd.f32 %v2957_v51, %v1249_v48  ;;  %v1323_v53 = vmul.f32 %v2962_v25, %v3092_v45  ;;  %v1392_v42 = vsel %vm1083_vm0, %v1320_v55, 0.0 }
 0x2e6   : > { %v2273_v57 = vpop.f32.mrf.mxu0  ;;  %1399 = vadd.xlane.f32.xlu0 %v1398_v52 }
 0x2e7   : > { %v3104_v58 = vadd.f32 %v2273_v57, %v2957_v51  ;;  %v1401_v59 = vsel %vm1083_vm0, %v1323_v53, 0.0  ;;  %v1321_v62 = vmul.f32 %v2962_v25, %v3096_v49  ;;  %v3156_v53 = vld [vmem:[#allocation2] ss:$0 sm:$0xff] }
 0x2e8   : > { %v1262_v56 = vpop.f32.mrf.mxu0  ;;  %1402 = vadd.xlane.f32.xlu1 %v1401_v59 }
 0x2e9   : > { %v3110_v37 = vadd.f32 %v2957_v51, %v1262_v56  ;;  %v1326_v1 = vmul.f32 %v2962_v25, %v3104_v58  ;;  %v1395_v6 = vsel %vm1083_vm0, %v1321_v62, 0.0 }
 0x2ea   : > { %v2274_v3 = vpop.f32.mrf.mxu0  ;;  %1393 = vadd.xlane.f32.xlu0 %v1392_v42 }
 0x2eb   : > { %v3116_v4 = vadd.f32 %v2274_v3, %v2957_v51  ;;  %v1410_v9 = vsel %vm1083_vm0, %v1326_v1, 0.0  ;;  %v1324_v12 = vmul.f32 %v2962_v25, %v3110_v37 }
 0x2ec   : > { %v1265_v7 = vpop.f32.mrf.mxu0  ;;  %1396 = vadd.xlane.f32.xlu1 %v1395_v6 }
 0x2ed   : > { %v3120_v8 = vadd.f32 %v2957_v51, %v1265_v7  ;;  %v1327_v11 = vmul.f32 %v2962_v25, %v3116_v4  ;;  %v1404_v26 = vsel %vm1083_vm0, %v1324_v12, 0.0 }
 0x2ee   : > { %v2277_v15 = vpop.f32.mrf.mxu0  ;;  %1411 = vadd.xlane.f32.xlu0 %v1410_v9 }
 0x2ef   : > { %v1413_v18 = vsel %vm1083_vm0, %v1327_v11, 0.0  ;;  %v1325_v19 = vmul.f32 %v2962_v25, %v3120_v8  ;;  %v3131_v13 = vadd.f32 %v2277_v15, %v2957_v51 }
 0x2f0   : > { %v1278_v20 = vpop.f32.mrf.mxu0  ;;  %1414 = vadd.xlane.f32.xlu1 %v1413_v18 }
 0x2f1   : > { %v3134_v23 = vadd.f32 %v2957_v51, %v1278_v20  ;;  %v1407_v30 = vsel %vm1083_vm0, %v1325_v19, 0.0  ;;  %v1330_v44 = vmul.f32 %v2962_v25, %v3131_v13 }
 0x2f2   : > { %v2278_v27 = vpop.f32.mrf.mxu0  ;;  %1405 = vadd.xlane.f32.xlu0 %v1404_v26 }
 0x2f3   : > { %v3138_v29 = vadd.f32 %v2278_v27, %v2957_v51  ;;  %v1328_v33 = vmul.f32 %v2962_v25, %v3134_v23  ;;  %v1422_v52 = vsel %vm1083_vm0, %v1330_v44, 0.0 }
 0x2f4   : > { %v1281_v35 = vpop.f32.mrf.mxu0  ;;  %1408 = vadd.xlane.f32.xlu1 %v1407_v30 }
 0x2f5   : > { %v3144_v36 = vadd.f32 %v2957_v51, %v1281_v35  ;;  %v1416_v41 = vsel %vm1083_vm0, %v1328_v33, 0.0  ;;  %v1331_v43 = vmul.f32 %v2962_v25, %v3138_v29 }
 0x2f6   : > { %1417 = vadd.xlane.f32.xlu0 %v1416_v41 }
 0x2f7   : > { %v1425_v47 = vsel %vm1083_vm0, %v1331_v43, 0.0  ;;  %v1329_v48 = vmul.f32 %v2962_v25, %v3144_v36 }
 0x2f8   : > { %1426 = vadd.xlane.f32.xlu1 %v1425_v47 }
 0x2f9   : > { %v1419_v51 = vsel %vm1083_vm0, %v1329_v48, 0.0 }
 0x2fa   : > { %1423 = vadd.xlane.f32.xlu0 %v1422_v52 }
 0x2fc   : > { %1420 = vadd.xlane.f32.xlu1 %v1419_v51 }
 0x345   : > { %v1340_v55 = vpop.xlane.xlu1 %1339 }
 0x346   : > { %v1437_v57 = vadd.f32 %v3156_v53, %v1340_v55 }
 0x347   : > { %v1334_v59 = vpop.xlane.xlu0 %1333 }
 0x348   : > { %v2038_v62 = vmul.f32 -1.442695, %v1437_v57  ;;  %v1435_v56 = vadd.f32 %v3156_v53, %v1334_v59 }
 0x349   : > { %v1343_v63 = vpop.xlane.xlu1 %1342 }
 0x34a   : > { %2384 = vpow2.f32 %v2038_v62  ;;  %v2036_v42 = vmul.f32 -1.442695, %v1435_v56  ;;  %v1438_v25 = vadd.f32 %v3156_v53, %v1343_v63 }
 0x34b   : > { %v1337_v1 = vpop.xlane.xlu0 %1336 }
 0x34c   : > { %2386 = vpow2.f32 %v2036_v42  ;;  %v2039_v3 = vmul.f32 -1.442695, %v1438_v25  ;;  %v1436_v6 = vadd.f32 %v3156_v53, %v1337_v1 }
 0x34e   : > { %2388 = vpow2.f32 %v2039_v3  ;;  %v2037_v7 = vmul.f32 -1.442695, %v1436_v6 }
 0x34f   : > { %v1352_v9 = vpop.xlane.xlu0 %1351 }
 0x350   : > { %2390 = vpow2.f32 %v2037_v7  ;;  %v1441_v11 = vadd.f32 %v3156_v53, %v1352_v9 }
 0x351   : > { %v1355_v12 = vpop.xlane.xlu1 %1354 }
 0x352   : > { %v2042_v15 = vmul.f32 -1.442695, %v1441_v11  ;;  %v1442_v18 = vadd.f32 %v3156_v53, %v1355_v12 }
 0x353   : > { %v1346_v19 = vpop.xlane.xlu0 %1345 }
 0x354   : > { %2392 = vpow2.f32 %v2042_v15  ;;  %v2043_v20 = vmul.f32 -1.442695, %v1442_v18  ;;  %v1439_v26 = vadd.f32 %v3156_v53, %v1346_v19 }
 0x355   : > { %v1349_v27 = vpop.xlane.xlu1 %1348 }
 0x356   : > { %v2040_v30 = vmul.f32 -1.442695, %v1439_v26  ;;  %v1440_v33 = vadd.f32 %v3156_v53, %v1349_v27  ;;  %2394 = vpow2.f32 %v2043_v20 }
 0x357   : > { %v2385_v35 = vpop.eup %2384  ;;  %v1364_v41 = vpop.xlane.xlu0 %1363 }
 0x358   : > { %v1565_v43 = vadd.f32 1.0, %v2385_v35  ;;  %2396 = vpow2.f32 %v2040_v30  ;;  %v2041_v44 = vmul.f32 -1.442695, %v1440_v33  ;;  %v1445_v47 = vadd.f32 %v3156_v53, %v1364_v41 }
 0x359   : > { %v2387_v48 = vpop.eup %2386  ;;  %v1367_v52 = vpop.xlane.xlu1 %1366 }
 0x35a   : > { %2398 = vrcp.f32 %v1565_v43  ;;  %v1563_v51 = vadd.f32 1.0, %v2387_v48  ;;  %v1446_v55 = vadd.f32 %v3156_v53, %v1367_v52  ;;  %v2046_v59 = vmul.f32 -1.442695, %v1445_v47 }
 0x35b   : > { %v2389_v57 = vpop.eup %2388  ;;  %2400 = vpow2.f32 %v2041_v44  ;;  %v1358_v62 = vpop.xlane.xlu0 %1357 }
 0x35c   : > { %2402 = vrcp.f32 %v1563_v51  ;;  %v1566_v56 = vadd.f32 1.0, %v2389_v57  ;;  %v2047_v63 = vmul.f32 -1.442695, %v1446_v55  ;;  %v1443_v42 = vadd.f32 %v3156_v53, %v1358_v62 }
 0x35d   : > { %v2391_v25 = vpop.eup %2390  ;;  %v1361_v1 = vpop.xlane.xlu1 %1360 }
 0x35e   : > { %2404 = vrcp.f32 %v1566_v56  ;;  %v1564_v3 = vadd.f32 1.0, %v2391_v25  ;;  %v1444_v6 = vadd.f32 %v3156_v53, %v1361_v1  ;;  %v2044_v9 = vmul.f32 -1.442695, %v1443_v42 }
 0x35f   : > { %2406 = vpow2.f32 %v2047_v63  ;;  %v1376_v7 = vpop.xlane.xlu0 %1375 }
 0x360   : > { %2408 = vpow2.f32 %v2046_v59  ;;  %v2045_v11 = vmul.f32 -1.442695, %v1444_v6  ;;  %v1449_v12 = vadd.f32 %v3156_v53, %v1376_v7 }
 0x361   : > { %v2393_v15 = vpop.eup %2392  ;;  %2410 = vrcp.f32 %v1564_v3  ;;  %v1379_v18 = vpop.xlane.xlu1 %1378 }
 0x362   : > { %v1569_v19 = vadd.f32 1.0, %v2393_v15  ;;  %2412 = vpow2.f32 %v2045_v11  ;;  %v1450_v20 = vadd.f32 %v3156_v53, %v1379_v18  ;;  %v2050_v30 = vmul.f32 -1.442695, %v1449_v12 }
 0x363   : > { %v1370_v26 = vpop.xlane.xlu0 %1369  ;;  %v2395_v27 = vpop.eup %2394  ;;  %2414 = vpow2.f32 %v2044_v9 }
 0x364   : > { %v2051_v33 = vmul.f32 -1.442695, %v1450_v20  ;;  %v1447_v35 = vadd.f32 %v3156_v53, %v1370_v26  ;;  %2416 = vrcp.f32 %v1569_v19  ;;  %v1570_v52 = vadd.f32 1.0, %v2395_v27 }
 0x365   : > { %v2397_v41 = vpop.eup %2396  ;;  %v1373_v43 = vpop.xlane.xlu1 %1372 }
 0x366   : > { %v1567_v44 = vadd.f32 1.0, %v2397_v41  ;;  %v1448_v47 = vadd.f32 %v3156_v53, %v1373_v43  ;;  %2418 = vpow2.f32 %v2051_v33  ;;  %v2048_v57 = vmul.f32 -1.442695, %v1447_v35 }
 0x367   : > { %v2399_v48 = vpop.eup %2398  ;;  %v1388_v51 = vpop.xlane.xlu0 %1387  ;;  %2420 = vpow2.f32 %v2050_v30 }
 0x368   : > { %v2401_v55 = vpop.eup %2400  ;;  %v2049_v59 = vmul.f32 -1.442695, %v1448_v47  ;;  %v1453_v62 = vadd.f32 %v3156_v53, %v1388_v51  ;;  %1671 = vperm.xlu1 %2346, %v2399_v48   ;;  %2422 = vrcp.f32 %v1567_v44 }
 0x369   : > { %v2403_v56 = vpop.eup %2402  ;;  %v1568_v63 = vadd.f32 1.0, %v2401_v55  ;;  %v1391_v42 = vpop.xlane.xlu1 %1390 }
 0x36a   : > { %2424 = vpow2.f32 %v2049_v59  ;;  %v1454_v25 = vadd.f32 %v3156_v53, %v1391_v42  ;;  %1661 = vperm.xlu0 %2347, %v2403_v56   ;;  %v2054_v7 = vmul.f32 -1.442695, %v1453_v62 }
 0x36b   : > { %v2405_v1 = vpop.eup %2404  ;;  %2426 = vrcp.f32 %v1570_v52  ;;  %v1382_v3 = vpop.xlane.xlu0 %1381 }
 0x36c   : > { %v2407_v6 = vpop.eup %2406  ;;  %2428 = vpow2.f32 %v2048_v57  ;;  %v2055_v9 = vmul.f32 -1.442695, %v1454_v25  ;;  %v1451_v11 = vadd.f32 %v3156_v53, %v1382_v3  ;;  %1676 = vperm.xlu1 %2346, %v2405_v1  }
 0x36d   : > { %v2409_v12 = vpop.eup %2408  ;;  %2430 = vrcp.f32 %v1568_v63  ;;  %v1574_v15 = vadd.f32 1.0, %v2407_v6  ;;  %v1385_v18 = vpop.xlane.xlu1 %1384 }
 0x36e   : > { %v2411_v19 = vpop.eup %2410  ;;  %2432 = vpow2.f32 %v2055_v9  ;;  %v2052_v20 = vmul.f32 -1.442695, %v1451_v11  ;;  %v1452_v26 = vadd.f32 %v3156_v53, %v1385_v18  ;;  %v1573_v43 = vadd.f32 1.0, %v2409_v12 }
 0x36f   : > { %v2413_v27 = vpop.eup %2412  ;;  %2434 = vrcp.f32 %v1574_v15  ;;  %v1400_v30 = vpop.xlane.xlu0 %1399 }
 0x370   : > { %v1572_v33 = vadd.f32 1.0, %v2413_v27  ;;  %2436 = vpow2.f32 %v2054_v7  ;;  %v2053_v35 = vmul.f32 -1.442695, %v1452_v26  ;;  %1666 = vperm.xlu1 %2346, %v2411_v19   ;;  %v2415_v41 = vpop.eup %2414  ;;  %v1457_v44 = vadd.f32 %v3156_v53, %v1400_v30 }
 0x371   : > { %2438 = vpow2.f32 %v2052_v20  ;;  %v1403_v47 = vpop.xlane.xlu1 %1402  ;;  %v2417_v52 = vpop.eup %2416  ;;  %v1571_v57 = vadd.f32 1.0, %v2415_v41 }
 0x372   : > { %2440 = vrcp.f32 %v1572_v33  ;;  %v1458_v48 = vadd.f32 %v3156_v53, %v1403_v47  ;;  %v2058_v63 = vmul.f32 -1.442695, %v1457_v44 }
 0x373   : > { %2442 = vpow2.f32 %v2053_v35  ;;  %v1394_v51 = vpop.xlane.xlu0 %1393  ;;  %v2419_v55 = vpop.eup %2418 }
 0x374   : > { %v2059_v59 = vmul.f32 -1.442695, %v1458_v48  ;;  %1691 = vperm.xlu1 %2346, %v2417_v52   ;;  %v2421_v62 = vpop.eup %2420  ;;  %2444 = vrcp.f32 %v1573_v43  ;;  %v1578_v56 = vadd.f32 1.0, %v2419_v55  ;;  %v1455_v42 = vadd.f32 %v3156_v53, %v1394_v51 }
 0x375   : > { %v1397_v25 = vpop.xlane.xlu1 %1396  ;;  %v2423_v1 = vpop.eup %2422  ;;  %v1577_v11 = vadd.f32 1.0, %v2421_v62 }
 0x376   : > { %2446 = vpow2.f32 %v2059_v59  ;;  %v1456_v3 = vadd.f32 %v3156_v53, %v1397_v25  ;;  %v2056_v19 = vmul.f32 -1.442695, %v1455_v42 }
 0x377   : > { %v2425_v6 = vpop.eup %2424  ;;  %2448 = vrcp.f32 %v1578_v56  ;;  %v1412_v7 = vpop.xlane.xlu0 %1411 }
 0x378   : > { %v2427_v9 = vpop.eup %2426  ;;  %2450 = vrcp.f32 %v1571_v57  ;;  %v1576_v12 = vadd.f32 1.0, %v2425_v6  ;;  %v2057_v15 = vmul.f32 -1.442695, %v1456_v3  ;;  %1681 = vperm.xlu1 %2346, %v2423_v1   ;;  %v1461_v20 = vadd.f32 %v3156_v53, %v1412_v7 }
 0x379   : > { %v2429_v18 = vpop.eup %2428  ;;  %2452 = vpow2.f32 %v2058_v63  ;;  %v1415_v26 = vpop.xlane.xlu1 %1414 }
 0x37a   : > { %v2431_v27 = vpop.eup %2430  ;;  %2454 = vrcp.f32 %v1576_v12  ;;  %v1462_v30 = vadd.f32 %v3156_v53, %v1415_v26  ;;  %v1575_v43 = vadd.f32 1.0, %v2429_v18  ;;  %v2062_v52 = vmul.f32 -1.442695, %v1461_v20 }
 0x37b   : > { %v2433_v33 = vpop.eup %2432  ;;  %2456 = vpow2.f32 %v2057_v15  ;;  %v1406_v35 = vpop.xlane.xlu0 %1405 }
 0x37c   : > { %v2435_v41 = vpop.eup %2434  ;;  %2458 = vrcp.f32 %v1577_v11  ;;  %v1582_v44 = vadd.f32 1.0, %v2433_v33  ;;  %v2063_v47 = vmul.f32 -1.442695, %v1462_v30  ;;  %1696 = vperm.xlu1 %2346, %v2427_v9   ;;  %v1459_v51 = vadd.f32 %v3156_v53, %v1406_v35 }
 0x37d   : > { %v2437_v48 = vpop.eup %2436  ;;  %2460 = vpow2.f32 %v2056_v19  ;;  %1716 = vperm.xlu0 %2347, %v2435_v41   ;;  %v1409_v55 = vpop.xlane.xlu1 %1408 }
 0x37e   : > { %v2439_v57 = vpop.eup %2438  ;;  %2462 = vrcp.f32 %v1582_v44  ;;  %v1460_v59 = vadd.f32 %v3156_v53, %v1409_v55  ;;  %v1581_v42 = vadd.f32 1.0, %v2437_v48  ;;  %v2060_v6 = vmul.f32 -1.442695, %v1459_v51 }
 0x37f   : > { %v2441_v62 = vpop.eup %2440  ;;  %2464 = vpow2.f32 %v2063_v47  ;;  %v1418_v56 = vpop.xlane.xlu0 %1417  ;;  %v1579_v15 = vadd.f32 1.0, %v2439_v57 }
 0x380   : > { %v2443_v63 = vpop.eup %2442  ;;  %2466 = vrcp.f32 %v1575_v43  ;;  %v2061_v25 = vmul.f32 -1.442695, %v1460_v59  ;;  %v1463_v1 = vadd.f32 %v3156_v53, %v1418_v56  ;;  %1686 = vperm.xlu1 %2346, %v2431_v27  }
 0x381   : > { %v1580_v3 = vadd.f32 1.0, %v2443_v63  ;;  %2468 = vpow2.f32 %v2062_v52  ;;  %1706 = vperm.xlu0 %2347, %v2441_v62   ;;  %v1427_v7 = vpop.xlane.xlu1 %1426  ;;  %v2445_v9 = vpop.eup %2444 }
 0x382   : > { %2470 = vpow2.f32 %v2061_v25  ;;  %v1466_v11 = vadd.f32 %v3156_v53, %v1427_v7  ;;  %v2064_v26 = vmul.f32 -1.442695, %v1463_v1 }
 0x383   : > { %v2447_v12 = vpop.eup %2446  ;;  %2472 = vrcp.f32 %v1580_v3  ;;  %v1424_v18 = vpop.xlane.xlu0 %1423 }
 0x384   : > { %v2449_v19 = vpop.eup %2448  ;;  %2474 = vrcp.f32 %v1581_v42  ;;  %v1586_v20 = vadd.f32 1.0, %v2447_v12  ;;  %1711 = vperm.xlu1 %2346, %v2445_v9   ;;  %v2067_v27 = vmul.f32 -1.442695, %v1466_v11  ;;  %v1465_v41 = vadd.f32 %v3156_v53, %v1424_v18 }
 0x385   : > { %v2451_v30 = vpop.eup %2450  ;;  %2476 = vpow2.f32 %v2060_v6  ;;  %1736 = vperm.xlu0 %2347, %v2449_v19   ;;  %v1421_v33 = vpop.xlane.xlu1 %1420 }
 0x386   : > { %v2453_v35 = vpop.eup %2452  ;;  %2478 = vrcp.f32 %v1586_v20  ;;  %v1464_v43 = vadd.f32 %v3156_v53, %v1421_v33  ;;  %v2066_v59 = vmul.f32 -1.442695, %v1465_v41 }
 0x387   : > { %v2455_v44 = vpop.eup %2454  ;;  %2480 = vrcp.f32 %v1579_v15  ;;  %v1585_v51 = vadd.f32 1.0, %v2453_v35 }
 0x388   : > { %v2457_v47 = vpop.eup %2456  ;;  %2482 = vpow2.f32 %v2064_v26  ;;  %v2065_v48 = vmul.f32 -1.442695, %v1464_v43  ;;  %1701 = vperm.xlu1 %2346, %v2451_v30  }
 0x389   : > { %v2459_v52 = vpop.eup %2458  ;;  %v1584_v55 = vadd.f32 1.0, %v2457_v47  ;;  %2484 = vpow2.f32 %v2067_v27  ;;  %1726 = vperm.xlu0 %2347, %v2455_v44  }
 0x38a   : > { %v2461_v57 = vpop.eup %2460  ;;  %2486 = vpow2.f32 %v2065_v48 }
 0x38b   : > { %v2463_v62 = vpop.eup %2462  ;;  %2488 = vrcp.f32 %v1584_v55  ;;  %v1583_v53 = vadd.f32 1.0, %v2461_v57 }
 0x38c   : > { %v2465_v56 = vpop.eup %2464  ;;  %1731 = vperm.xlu1 %2346, %v2459_v52   ;;  %2490 = vrcp.f32 %v1585_v51 }
 0x38d   : > { %v2467_v63 = vpop.eup %2466  ;;  %v1590_v42 = vadd.f32 1.0, %v2465_v56  ;;  %1756 = vperm.xlu0 %2347, %v2463_v62   ;;  %2492 = vpow2.f32 %v2066_v59 }
 0x38e   : > { %v2469_v25 = vpop.eup %2468 }
 0x38f   : > { %v2471_v1 = vpop.eup %2470  ;;  %2494 = vrcp.f32 %v1590_v42  ;;  %v1589_v11 = vadd.f32 1.0, %v2469_v25 }
 0x390   : > { %v2473_v3 = vpop.eup %2472  ;;  %v1588_v6 = vadd.f32 1.0, %v2471_v1  ;;  %1721 = vperm.xlu1 %2346, %v2467_v63   ;;  %2496 = vrcp.f32 %v1583_v53 }
 0x391   : > { %v2475_v7 = vpop.eup %2474  ;;  %1746 = vperm.xlu0 %2347, %v2473_v3  }
 0x392   : > { %v2477_v9 = vpop.eup %2476  ;;  %2498 = vrcp.f32 %v1588_v6 }
 0x393   : > { %v2479_v12 = vpop.eup %2478  ;;  %v1587_v19 = vadd.f32 1.0, %v2477_v9  ;;  %2500 = vrcp.f32 %v1589_v11 }
 0x394   : > { %v2481_v15 = vpop.eup %2480  ;;  %1751 = vperm.xlu1 %2346, %v2475_v7  }
 0x395   : > { %v2483_v18 = vpop.eup %2482  ;;  %1776 = vperm.xlu0 %2347, %v2479_v12   ;;  %2502 = vrcp.f32 %v1587_v19 }
 0x396   : > { %v2485_v20 = vpop.eup %2484  ;;  %v1591_v33 = vadd.f32 1.0, %v2483_v18 }
 0x397   : > { %v2487_v26 = vpop.eup %2486  ;;  %v1594_v41 = vadd.f32 1.0, %v2485_v20 }
 0x398   : > { %v2489_v30 = vpop.eup %2488  ;;  %v1592_v27 = vadd.f32 1.0, %v2487_v26  ;;  %1741 = vperm.xlu1 %2346, %v2481_v15  }
 0x399   : > { %1766 = vperm.xlu0 %2347, %v2489_v30   ;;  %v2491_v35 = vpop.eup %2490 }
 0x39a   : > { %2504 = vrcp.f32 %v1592_v27  ;;  %v2493_v43 = vpop.eup %2492 }
 0x39b   : > { %2506 = vrcp.f32 %v1591_v33  ;;  %v1593_v48 = vadd.f32 1.0, %v2493_v43 }
 0x39c   : > { %v2495_v44 = vpop.eup %2494  ;;  %1771 = vperm.xlu1 %2346, %v2491_v35   ;;  %2508 = vrcp.f32 %v1594_v41 }
 0x39d   : > { %1796 = vperm.xlu0 %2347, %v2495_v44   ;;  %v2497_v47 = vpop.eup %2496  ;;  %2510 = vrcp.f32 %v1593_v48 }
 0x39f   : > { %v2499_v52 = vpop.eup %2498 }
 0x3a0   : > { %1761 = vperm.xlu1 %2346, %v2497_v47   ;;  %v2501_v51 = vpop.eup %2500 }
 0x3a1   : > { %1786 = vperm.xlu0 %2347, %v2499_v52  }
 0x3a2   : > { %v2503_v55 = vpop.eup %2502 }
 0x3a4   : > { %1791 = vperm.xlu1 %2346, %v2501_v51  }
 0x3a7   : > { %v2505_v57 = vpop.eup %2504 }
 0x3a8   : > { %1806 = vperm.xlu0 %2347, %v2505_v57   ;;  %1781 = vperm.xlu1 %2346, %v2503_v55   ;;  %v2507_v59 = vpop.eup %2506 }
 0x3a9   : > { %v2509_v62 = vpop.eup %2508 }
 0x3aa   : > { %v2511_v56 = vpop.eup %2510 }
 0x3ac   : > { %1816 = vperm.xlu0 %2347, %v2509_v62   ;;  %1801 = vperm.xlu1 %2346, %v2507_v59  }
 0x3b0   : > { %1811 = vperm.xlu1 %2346, %v2511_v56  }
 0x3e3   : > { %v1672_v63 = vpop.permute.xlu1 %1671 }
 0x3e4   : > { %v1821_v53 = vsel %vm1083_vm0, %v2965_v61, %v1672_v63 }
 0x3e5   : > { %1853 = vst [vmem:[%s3193_s20 + $0x10] sm:$0xff] %v1821_v53  ;;  %v1662_v42 = vpop.permute.xlu0 %1661 }
 0x3e6   : > { %v1819_v25 = vsel %vm1083_vm0, %v2968_v14, %v1662_v42 }
 0x3e7   : > { %1851 = vst [vmem:[%s3193_s20] sm:$0xff] %v1819_v25  ;;  %v1677_v1 = vpop.permute.xlu1 %1676 }
 0x3e8   : > { %v1822_v3 = vsel %vm1083_vm0, %v2973_v17, %v1677_v1 }
 0x3e9   : > { %1854 = vst [vmem:[%s3193_s20 + $0x18] sm:$0xff] %v1822_v3 }
 0x3eb   : > { %v1667_v61 = vpop.permute.xlu1 %1666 }
 0x3ec   : > { %v1820_v6 = vsel %vm1083_vm0, %v2979_v21, %v1667_v61 }
 0x3ed   : > { %1852 = vst [vmem:[%s3193_s20 + $0x8] sm:$0xff] %v1820_v6 }
 0x3ef   : > { %v1692_v7 = vpop.permute.xlu1 %1691 }
 0x3f0   : > { %v1825_v9 = vsel %vm1083_vm0, %v2985_v24, %v1692_v7 }
 0x3f1   : > { %1857 = vst [vmem:[%s3193_s20 + $0x30] sm:$0xff] %v1825_v9 }
 0x3f3   : > { %v1682_v14 = vpop.permute.xlu1 %1681 }
 0x3f4   : > { %v1823_v11 = vsel %vm1083_vm0, %v2991_v28, %v1682_v14 }
 0x3f5   : > { %1855 = vst [vmem:[%s3193_s20 + $0x20] sm:$0xff] %v1823_v11 }
 0x3f7   : > { %v1697_v17 = vpop.permute.xlu1 %1696 }
 0x3f8   : > { %v1826_v12 = vsel %vm1083_vm0, %v2997_v32, %v1697_v17  ;;  %v1717_v21 = vpop.permute.xlu0 %1716 }
 0x3f9   : > { %1858 = vst [vmem:[%s3193_s20 + $0x38] sm:$0xff] %v1826_v12  ;;  %v1830_v15 = vsel %vm1083_vm0, %v3020_v50, %v1717_v21 }
 0x3fa   : > { %1862 = vst [vmem:[%s3193_s20 + $0x58] sm:$0xff] %v1830_v15 }
 0x3fb   : > { %v1687_v24 = vpop.permute.xlu1 %1686 }
 0x3fc   : > { %v1824_v18 = vsel %vm1083_vm0, %v3000_v34, %v1687_v24  ;;  %v1707_v28 = vpop.permute.xlu0 %1706 }
 0x3fd   : > { %1856 = vst [vmem:[%s3193_s20 + $0x28] sm:$0xff] %v1824_v18  ;;  %v1828_v19 = vsel %vm1083_vm0, %v3024_v54, %v1707_v28 }
 0x3fe   : > { %1860 = vst [vmem:[%s3193_s20 + $0x48] sm:$0xff] %v1828_v19 }
 0x3ff   : > { %v1712_v32 = vpop.permute.xlu1 %1711 }
 0x400   : > { %v1829_v20 = vsel %vm1083_vm0, %v3008_v39, %v1712_v32  ;;  %v1737_v50 = vpop.permute.xlu0 %1736 }
 0x401   : > { %1861 = vst [vmem:[%s3193_s20 + $0x50] sm:$0xff] %v1829_v20  ;;  %v1834_v26 = vsel %vm1083_vm0, %v3044_v2, %v1737_v50 }
 0x402   : > { %1866 = vst [vmem:[%s3193_s20 + $0x78] sm:$0xff] %v1834_v26 }
 0x403   : > { %v1702_v34 = vpop.permute.xlu1 %1701 }
 0x404   : > { %v1827_v30 = vsel %vm1083_vm0, %v3014_v46, %v1702_v34  ;;  %v1727_v54 = vpop.permute.xlu0 %1726 }
 0x405   : > { %1859 = vst [vmem:[%s3193_s20 + $0x40] sm:$0xff] %v1827_v30  ;;  %v1832_v27 = vsel %vm1083_vm0, %v3048_v5, %v1727_v54 }
 0x406   : > { %1864 = vst [vmem:[%s3193_s20 + $0x68] sm:$0xff] %v1832_v27 }
 0x407   : > { %v1732_v39 = vpop.permute.xlu1 %1731 }
 0x408   : > { %v1833_v33 = vsel %vm1083_vm0, %v3032_v60, %v1732_v39  ;;  %v1757_v2 = vpop.permute.xlu0 %1756 }
 0x409   : > { %1865 = vst [vmem:[%s3193_s20 + $0x70] sm:$0xff] %v1833_v33  ;;  %v1838_v35 = vsel %vm1083_vm0, %v3068_v22, %v1757_v2 }
 0x40a   : > { %1870 = vst [vmem:[%s3193_s20 + $0x98] sm:$0xff] %v1838_v35 }
 0x40b   : > { %v1722_v46 = vpop.permute.xlu1 %1721 }
 0x40c   : > { %v1831_v41 = vsel %vm1083_vm0, %v3038_v0, %v1722_v46  ;;  %v1747_v5 = vpop.permute.xlu0 %1746 }
 0x40d   : > { %1863 = vst [vmem:[%s3193_s20 + $0x60] sm:$0xff] %v1831_v41  ;;  %v1836_v43 = vsel %vm1083_vm0, %v3072_v40, %v1747_v5 }
 0x40e   : > { %1868 = vst [vmem:[%s3193_s20 + $0x88] sm:$0xff] %v1836_v43 }
 0x40f   : > { %v1752_v60 = vpop.permute.xlu1 %1751 }
 0x410   : > { %v1837_v44 = vsel %vm1083_vm0, %v3056_v10, %v1752_v60  ;;  %v1777_v22 = vpop.permute.xlu0 %1776 }
 0x411   : > { %1869 = vst [vmem:[%s3193_s20 + $0x90] sm:$0xff] %v1837_v44  ;;  %v1842_v47 = vsel %vm1083_vm0, %v3092_v45, %v1777_v22 }
 0x412   : > { %1874 = vst [vmem:[%s3193_s20 + $0xb8] sm:$0xff] %v1842_v47 }
 0x413   : > { %v1742_v0 = vpop.permute.xlu1 %1741 }
 0x414   : > { %v1835_v48 = vsel %vm1083_vm0, %v3062_v16, %v1742_v0  ;;  %v1767_v40 = vpop.permute.xlu0 %1766 }
 0x415   : > { %1867 = vst [vmem:[%s3193_s20 + $0x80] sm:$0xff] %v1835_v48  ;;  %v1840_v52 = vsel %vm1083_vm0, %v3096_v49, %v1767_v40 }
 0x416   : > { %1872 = vst [vmem:[%s3193_s20 + $0xa8] sm:$0xff] %v1840_v52 }
 0x417   : > { %v1772_v10 = vpop.permute.xlu1 %1771 }
 0x418   : > { %v1841_v51 = vsel %vm1083_vm0, %v3080_v31, %v1772_v10  ;;  %v1797_v55 = vpop.permute.xlu0 %1796 }
 0x419   : > { %1873 = vst [vmem:[%s3193_s20 + $0xb0] sm:$0xff] %v1841_v51  ;;  %v1846_v45 = vsel %vm1083_vm0, %v3116_v4, %v1797_v55 }
 0x41a   : > { %1878 = vst [vmem:[%s3193_s20 + $0xd8] sm:$0xff] %v1846_v45 }
 0x41b   : > { %v1762_v16 = vpop.permute.xlu1 %1761 }
 0x41c   : > { %v1839_v57 = vsel %vm1083_vm0, %v3086_v38, %v1762_v16  ;;  %v1787_v49 = vpop.permute.xlu0 %1786 }
 0x41d   : > { %1871 = vst [vmem:[%s3193_s20 + $0xa0] sm:$0xff] %v1839_v57  ;;  %v1844_v59 = vsel %vm1083_vm0, %v3120_v8, %v1787_v49 }
 0x41e   : > { %1876 = vst [vmem:[%s3193_s20 + $0xc8] sm:$0xff] %v1844_v59 }
 0x41f   : > { %v1792_v31 = vpop.permute.xlu1 %1791 }
 0x420   : > { %v1845_v4 = vsel %vm1083_vm0, %v3104_v58, %v1792_v31 }
 0x421   : > { %1877 = vst [vmem:[%s3193_s20 + $0xd0] sm:$0xff] %v1845_v4 }
 0x423   : > { %v1782_v62 = vpop.permute.xlu1 %1781  ;;  %v1807_v56 = vpop.permute.xlu0 %1806 }
 0x424   : > { %v1843_v38 = vsel %vm1083_vm0, %v3110_v37, %v1782_v62  ;;  %v1848_v63 = vsel %vm1083_vm0, %v3144_v36, %v1807_v56 }
 0x425   : > { %1875 = vst [vmem:[%s3193_s20 + $0xc0] sm:$0xff] %v1843_v38  ;;  %1880 = vst [vmem:[%s3193_s20 + $0xe8] sm:$0xff] %v1848_v63 }
 0x427   : > { %v1802_v8 = vpop.permute.xlu1 %1801  ;;  %v1817_v53 = vpop.permute.xlu0 %1816 }
 0x428   : > { %v1847_v58 = vsel %vm1083_vm0, %v3134_v23, %v1802_v8  ;;  %v1850_v42 = vsel %vm1083_vm0, %v3138_v29, %v1817_v53 }
 0x429   : > { %1879 = vst [vmem:[%s3193_s20 + $0xe0] sm:$0xff] %v1847_v58  ;;  %1882 = vst [vmem:[%s3193_s20 + $0xf8] sm:$0xff] %v1850_v42 }
 0x42b   : > { %v1812_v37 = vpop.permute.xlu1 %1811 }
 0x42c   : > { %v1849_v36 = vsel %vm1083_vm0, %v3131_v13, %v1812_v37 }
 0x42d   : > { %1881 = vst [vmem:[%s3193_s20 + $0xf0] sm:$0xff] %v1849_v36 }
 0x42e   : > { %2553 = shalt.err (!%p2550_p10)
}
 0x42f   : > { %s2554_s18 = scalar_lea.hbm %s3291_s24, 4096  ;;  %s2558_s20 = scalar_lea.hbm %s3348_s9, 8192 }
 0x430   : > { %p2555_p0 = scmp.ne.s32.totalorder %s3291_s24, %s2554_s18  ;;  %p2559_p1 = scmp.lt.s32.totalorder %s3291_s24, %s3348_s9 }
 0x431   : > { %p2560_p3 = scmp.lt.s32.totalorder %s2558_s20, %s2554_s18 }
 0x432   : > { %p2556_p2 = pnand %p2555_p0, %p3358_p12 }
 0x433   : > { %p2561_p6 = por %p2560_p3, %p2559_p1 }
 0x434   : > { %p2557_p9 = pneg %p2556_p2 }
 0x436   : > { %p2562_p11 = pnand %p2561_p6, %p2557_p9 }
 0x438   : > { %2565 = shalt.err (!%p2562_p11)
}
 0x439   : > { %s2611_s17 = smov 128   ;;  %s2612_s30 = smov 8  }
 0x43a   : > { %2297 = dma.vmem_to_hbm [thread:$0]  (%p3358_p12), %s3293_s10, 4096, %s3291_s24, %s1884_s8, %s2611_s17, %s2611_s17, %s2612_s30  }
 0x43b PF: > { %s1912_s21 = sand.u32 1, %s2592_s11   ;;  %p3359_p13 = scmp.ne.s32.totalorder %s3355_s23, 0 }
 0x43c   : > { %p3360_p4 = scmp.ge.s32.totalorder %s2604_s14, 2  ;;  %s1913_s25 = scalar_lea.sflag [#allocation5], %s1912_s21 }
 0x43e   : > { %p2304_p5 = pnand %p3360_p4, %p3359_p13 }
 0x440   : > { %p2305_p7 = pneg %p2304_p5 }
 0x442   : > { %2587 = dma.done.wait (%p2305_p7), %s1913_s25, 4096  }
 0x443   : > { %2589 = vsyncadd (%p2305_p7), %s1913_s25, 4294963200  ;;  %s3361_s28 = sld [smem:[#allocation9_spill]]  ;;  %p24_p8 = scmp.ge.s32.totalorder %s2691_s16, 4  }
 0x444   : > { %s3362_s11 = smov %s2596_s12  ;;  %s3363_s12 = smov %s2600_s13 }
 0x445   : > { %s3365_s14 = smov %s2691_s16  ;;  %26 = sbr.rel (!%p24_p8) target bundleno = 8 (0x8), region = 101 }
 0x449   : > { %s3364_s13 = smov %s3361_s28 }
 0x44a   :  { %1918 = vsyncpa [#allocation4], 1 }
 0x44b   :  { %1920 = vsyncpa [#allocation4 + $0x1], 1 }
 0x44c   :  { %1921 = vsyncpa [#allocation5], 1 }
 0x44d   :  { %1923 = vsyncpa [#allocation5 + $0x1], 1 }

</bundles_post_ra>
